<compile_context>
chip_gen: v5e
topology: v5e:2x2
jax: 0.10.0
libtpu: 0.0.40
codegen_flags: <defaults>
</compile_context>

<pallas_src>
import math

import jax
import jax.numpy as jnp
from jax.experimental import pallas as pl
from jax.experimental.pallas import tpu as pltpu

_LANE = 128
_VMEM_LIMIT = 32 * 1024 * 1024   # fits v5e/v6e (128 MiB) and v7x (64 MiB)


def _round_up(x, m):
    return ((x + m - 1) // m) * m


def _pick_tile(s, candidates=(512, 256, 128, 64, 32, 16, 8)):
    """Largest candidate tile dividing s (per-grid-step overhead ~0.35us)."""
    for t in candidates:
        if s % t == 0:
            return t
    return s


# --------------------------------------------------------------------------
# Fused kernel: Q/K/V projection + softmax(Q K^T) V + gamma*out + x residual
# Grid: (batch, q-tile).  K/V are computed from the full sequence each step.
# --------------------------------------------------------------------------
def _fused_attn_kernel(gamma_ref, xq_ref, xkv_ref, wq_ref, bq_ref,
                       wk_ref, bk_ref, wv_ref, bv_ref, o_ref):
    xq = xq_ref[0]     # (TQ, C)  rows of this q-tile (also the residual)
    xkv = xkv_ref[0]   # (S,  C)  full sequence for K / V

    # 1x1-conv projections (per-pixel linear maps).  Weight columns are
    # zero-padded to Dp=128 lanes; padded Q/K columns are exactly 0.
    q = jnp.dot(xq, wq_ref[...], preferred_element_type=jnp.float32) + bq_ref[...]   # (TQ, Dp)
    k = jnp.dot(xkv, wk_ref[...], preferred_element_type=jnp.float32) + bk_ref[...]  # (S,  Dp)
    v = jnp.dot(xkv, wv_ref[...], preferred_element_type=jnp.float32) + bv_ref[...]  # (S,  C)

    # energy = Q @ K^T  (no 1/sqrt(d_k) scaling — matches the PyTorch module)
    s = jax.lax.dot_general(q, k, (((1,), (1,)), ((), ())),
                            preferred_element_type=jnp.float32)                      # (TQ, S)

    # One-shot numerically-stable softmax over the full key axis.
    m = jnp.max(s, axis=-1, keepdims=True)
    p = jnp.exp(s - m)
    denom = jnp.sum(p, axis=-1, keepdims=True)                                       # >= 1

    attn_v = jnp.dot(p, v, preferred_element_type=jnp.float32)                       # (TQ, C)
    out = attn_v * pl.reciprocal(denom, approx=True)

    gamma = gamma_ref[0, 0]                  # scalar from SMEM
    o_ref[0] = gamma * out + xq              # fused residual


# --------------------------------------------------------------------------
# Wrapper
# --------------------------------------------------------------------------
def self_attention(x_nchw, params):
    """Forward pass of SelfAttention. Input/output are NCHW (PyTorch layout)."""
    B, C, H, W = x_nchw.shape
    S = H * W
    Cqk = params["wq"].shape[1]
    Dp = _round_up(Cqk, _LANE)   # lane-dense padded query/key width

    # Glue: NCHW -> (B, S, C); channels stay UNPADDED in HBM.
    x_bsc = jnp.transpose(x_nchw, (0, 2, 3, 1)).reshape(B, S, C).astype(jnp.float32)

    wq = jnp.pad(params["wq"].astype(jnp.float32), ((0, 0), (0, Dp - Cqk)))
    bq = jnp.pad(params["bq"].astype(jnp.float32), ((0, Dp - Cqk),)).reshape(1, Dp)
    wk = jnp.pad(params["wk"].astype(jnp.float32), ((0, 0), (0, Dp - Cqk)))
    bk = jnp.pad(params["bk"].astype(jnp.float32), ((0, Dp - Cqk),)).reshape(1, Dp)
    wv = params["wv"].astype(jnp.float32)                      # (C, C)
    bv = params["bv"].astype(jnp.float32).reshape(1, C)
    gamma = params["gamma"].astype(jnp.float32).reshape(1, 1)

    tq = _pick_tile(S)
    grid = (B, S // tq)

    y = pl.pallas_call(
        _fused_attn_kernel,
        out_shape=jax.ShapeDtypeStruct((B, S, C), jnp.float32),
        grid=grid,
        in_specs=[
            pl.BlockSpec(memory_space=pltpu.MemorySpace.SMEM),        # gamma (1,1)
            pl.BlockSpec((1, tq, C), lambda b, qi: (b, qi, 0)),       # x: q-tile rows / residual
            pl.BlockSpec((1, S, C), lambda b, qi: (b, 0, 0)),         # x: full sequence for K/V
            pl.BlockSpec((C, Dp), lambda b, qi: (0, 0)),              # wq (VMEM-resident)
            pl.BlockSpec((1, Dp), lambda b, qi: (0, 0)),              # bq
            pl.BlockSpec((C, Dp), lambda b, qi: (0, 0)),              # wk
            pl.BlockSpec((1, Dp), lambda b, qi: (0, 0)),              # bk
            pl.BlockSpec((C, C), lambda b, qi: (0, 0)),               # wv
            pl.BlockSpec((1, C), lambda b, qi: (0, 0)),               # bv
        ],
        out_specs=pl.BlockSpec((1, tq, C), lambda b, qi: (b, qi, 0)),
        compiler_params=pltpu.CompilerParams(
            dimension_semantics=("parallel", "parallel"),
            vmem_limit_bytes=_VMEM_LIMIT,
        ),
    )(gamma, x_bsc, x_bsc, wq, bq, wk, bk, wv, bv)

    return jnp.transpose(y.reshape(B, H, W, C), (0, 3, 1, 2))   # back to NCHW


# --------------------------------------------------------------------------
# Parameters / reference / demo
# --------------------------------------------------------------------------
def init_params(key, in_channels):
    """Synthetic parameters matching nn.Conv2d(kernel_size=1) shapes.

    Conv weights are stored as (Cin, Cout) == PyTorch (Cout, Cin, 1, 1)
    squeezed and transposed.  PyTorch initializes gamma to 0; we use 0.5 so
    the attention path is actually exercised by the demo.
    """
    c = in_channels
    cqk = in_channels // 8
    k1, k2, k3, k4, k5, k6 = jax.random.split(key, 6)
    s = 1.0 / math.sqrt(c)
    return {
        "wq": jax.random.normal(k1, (c, cqk), jnp.float32) * s,
        "bq": jax.random.normal(k2, (cqk,), jnp.float32) * 0.1,
        "wk": jax.random.normal(k3, (c, cqk), jnp.float32) * s,
        "bk": jax.random.normal(k4, (cqk,), jnp.float32) * 0.1,
        "wv": jax.random.normal(k5, (c, c), jnp.float32) * s,
        "bv": jax.random.normal(k6, (c,), jnp.float32) * 0.1,
        "gamma": jnp.asarray(0.5, jnp.float32),
    }


def _reference(x_nchw, params):
    # Pure-JAX replica of the PyTorch forward (ground truth for the check).
    B, C, H, W = x_nchw.shape
    S = H * W
    hi = jax.lax.Precision.HIGHEST
    xs = jnp.transpose(x_nchw, (0, 2, 3, 1)).reshape(B, S, C).astype(jnp.float32)
    q = jnp.einsum("bsc,cd->bsd", xs, params["wq"], precision=hi) + params["bq"]
    k = jnp.einsum("bsc,cd->bsd", xs, params["wk"], precision=hi) + params["bk"]
    v = jnp.einsum("bsc,cd->bsd", xs, params["wv"], precision=hi) + params["bv"]
    energy = jnp.einsum("bqd,bkd->bqk", q, k, precision=hi)
    attn = jax.nn.softmax(energy, axis=-1)
    out = jnp.einsum("bqk,bkc->bqc", attn, v, precision=hi)
    y = params["gamma"] * out + xs
    return jnp.transpose(y.reshape(B, H, W, C), (0, 3, 1, 2))


if __name__ == "__main__":
    B, C, H, W = 2, 32, 16, 16          # in_channels must be a multiple of 8
    root = jax.random.PRNGKey(0)
    kx, kp = jax.random.split(root)
    x = jax.random.normal(kx, (B, C, H, W), jnp.float32)   # NCHW, like PyTorch
    params = init_params(kp, C)

    fwd = jax.jit(self_attention)
    out = fwd(x, params)
    jax.block_until_ready(out)

    assert out.shape == (B, C, H, W), out.shape
    assert bool(jnp.all(jnp.isfinite(out)))

    ref = _reference(x, params)
    max_err = float(jnp.max(jnp.abs(out - ref)))
    # f32 path everywhere; 5e-3 budget covers the approx EUP reciprocal.
    assert max_err < 5e-3, f"max abs error vs reference: {max_err}"

    print("KERNEL_OK")
</pallas_src>

<mosaic_0001>
module attributes {stable_mosaic.version = 11 : i64} {
  func.func @_fused_attn_kernel(%arg0: i32, %arg1: i32, %arg2: memref<1x1xf32, #tpu.memory_space<smem>>, %arg3: memref<1x256x32xf32, #tpu.memory_space<vmem>>, %arg4: memref<1x256x32xf32, #tpu.memory_space<vmem>>, %arg5: memref<32x128xf32, #tpu.memory_space<vmem>>, %arg6: memref<1x128xf32, #tpu.memory_space<vmem>>, %arg7: memref<32x128xf32, #tpu.memory_space<vmem>>, %arg8: memref<1x128xf32, #tpu.memory_space<vmem>>, %arg9: memref<32x32xf32, #tpu.memory_space<vmem>>, %arg10: memref<1x32xf32, #tpu.memory_space<vmem>>, %arg11: memref<1x256x32xf32, #tpu.memory_space<vmem>>) attributes {dimension_semantics = [#tpu.dimension_semantics<parallel>, #tpu.dimension_semantics<parallel>], iteration_bounds = array<i64: 2, 1>, scalar_prefetch = 0 : i64, scratch_operands = 0 : i64, tpu.core_type = #tpu.core_type<tc>, window_params = [{transform_indices = @transform_0, window_bounds = array<i64: 1, 1>}, {transform_indices = @transform_1, window_bounds = array<i64: 1, 256, 32>}, {transform_indices = @transform_2, window_bounds = array<i64: 1, 256, 32>}, {pipeline_mode = #tpu.pipeline_mode<synchronous>, transform_indices = @transform_3, window_bounds = array<i64: 32, 128>}, {pipeline_mode = #tpu.pipeline_mode<synchronous>, transform_indices = @transform_4, window_bounds = array<i64: 1, 128>}, {pipeline_mode = #tpu.pipeline_mode<synchronous>, transform_indices = @transform_5, window_bounds = array<i64: 32, 128>}, {pipeline_mode = #tpu.pipeline_mode<synchronous>, transform_indices = @transform_6, window_bounds = array<i64: 1, 128>}, {pipeline_mode = #tpu.pipeline_mode<synchronous>, transform_indices = @transform_7, window_bounds = array<i64: 32, 32>}, {pipeline_mode = #tpu.pipeline_mode<synchronous>, transform_indices = @transform_8, window_bounds = array<i64: 1, 32>}, {transform_indices = @transform_9, window_bounds = array<i64: 1, 256, 32>}]} {
    %c0 = arith.constant 0 : index
    %c0_0 = arith.constant 0 : index
    %c0_1 = arith.constant 0 : index
    %0 = vector.load %arg3[%c0, %c0_0, %c0_1] : memref<1x256x32xf32, #tpu.memory_space<vmem>>, vector<1x256x32xf32>
    %1 = vector.shape_cast %0 : vector<1x256x32xf32> to vector<256x32xf32>
    %c0_2 = arith.constant 0 : index
    %c0_3 = arith.constant 0 : index
    %c0_4 = arith.constant 0 : index
    %2 = vector.load %arg4[%c0_2, %c0_3, %c0_4] : memref<1x256x32xf32, #tpu.memory_space<vmem>>, vector<1x256x32xf32>
    %3 = vector.shape_cast %2 : vector<1x256x32xf32> to vector<256x32xf32>
    %c0_5 = arith.constant 0 : index
    %c0_6 = arith.constant 0 : index
    %4 = vector.load %arg5[%c0_5, %c0_6] : memref<32x128xf32, #tpu.memory_space<vmem>>, vector<32x128xf32>
    %cst = arith.constant dense<0.000000e+00> : vector<256x128xf32>
    %5 = tpu.matmul %1, %4, %cst {dimension_numbers = #tpu.dot_dimension_numbers<[1], [0], [0], [1], [0, 0, 1, 1], [], []>} : vector<256x32xf32>, vector<32x128xf32>, vector<256x128xf32> -> vector<256x128xf32>
    %c0_7 = arith.constant 0 : index
    %c0_8 = arith.constant 0 : index
    %6 = vector.load %arg6[%c0_7, %c0_8] : memref<1x128xf32, #tpu.memory_space<vmem>>, vector<1x128xf32>
    %7 = vector.broadcast %6 : vector<1x128xf32> to vector<256x128xf32>
    %8 = arith.addf %5, %7 : vector<256x128xf32>
    %c0_9 = arith.constant 0 : index
    %c0_10 = arith.constant 0 : index
    %9 = vector.load %arg7[%c0_9, %c0_10] : memref<32x128xf32, #tpu.memory_space<vmem>>, vector<32x128xf32>
    %cst_11 = arith.constant dense<0.000000e+00> : vector<256x128xf32>
    %10 = tpu.matmul %3, %9, %cst_11 {dimension_numbers = #tpu.dot_dimension_numbers<[1], [0], [0], [1], [0, 0, 1, 1], [], []>} : vector<256x32xf32>, vector<32x128xf32>, vector<256x128xf32> -> vector<256x128xf32>
    %c0_12 = arith.constant 0 : index
    %c0_13 = arith.constant 0 : index
    %11 = vector.load %arg8[%c0_12, %c0_13] : memref<1x128xf32, #tpu.memory_space<vmem>>, vector<1x128xf32>
    %12 = vector.broadcast %11 : vector<1x128xf32> to vector<256x128xf32>
    %13 = arith.addf %10, %12 : vector<256x128xf32>
    %c0_14 = arith.constant 0 : index
    %c0_15 = arith.constant 0 : index
    %14 = vector.load %arg9[%c0_14, %c0_15] : memref<32x32xf32, #tpu.memory_space<vmem>>, vector<32x32xf32>
    %cst_16 = arith.constant dense<0.000000e+00> : vector<256x32xf32>
    %15 = tpu.matmul %3, %14, %cst_16 {dimension_numbers = #tpu.dot_dimension_numbers<[1], [0], [0], [1], [0, 0, 1, 1], [], []>} : vector<256x32xf32>, vector<32x32xf32>, vector<256x32xf32> -> vector<256x32xf32>
    %c0_17 = arith.constant 0 : index
    %c0_18 = arith.constant 0 : index
    %16 = vector.load %arg10[%c0_17, %c0_18] : memref<1x32xf32, #tpu.memory_space<vmem>>, vector<1x32xf32>
    %17 = vector.broadcast %16 : vector<1x32xf32> to vector<256x32xf32>
    %18 = arith.addf %15, %17 : vector<256x32xf32>
    %cst_19 = arith.constant dense<0.000000e+00> : vector<256x256xf32>
    %19 = tpu.matmul %8, %13, %cst_19 {dimension_numbers = #tpu.dot_dimension_numbers<[1], [1], [0], [0], [0, 0, 1, 0], [], []>} : vector<256x128xf32>, vector<256x128xf32>, vector<256x256xf32> -> vector<256x256xf32>
    %cst_20 = arith.constant dense<0xFF800000> : vector<256xf32>
    %20 = vector.multi_reduction <maximumf>, %19, %cst_20 [1] : vector<256x256xf32> to vector<256xf32>
    %21 = vector.shape_cast %20 : vector<256xf32> to vector<256x1xf32>
    %22 = vector.broadcast %21 : vector<256x1xf32> to vector<256x256xf32>
    %23 = arith.subf %19, %22 : vector<256x256xf32>
    %24 = math.exp %23 : vector<256x256xf32>
    %cst_21 = arith.constant dense<0.000000e+00> : vector<256xf32>
    %25 = vector.multi_reduction <add>, %24, %cst_21 [1] : vector<256x256xf32> to vector<256xf32>
    %26 = vector.shape_cast %25 : vector<256xf32> to vector<256x1xf32>
    %cst_22 = arith.constant dense<0.000000e+00> : vector<256x32xf32>
    %27 = tpu.matmul %24, %18, %cst_22 {dimension_numbers = #tpu.dot_dimension_numbers<[1], [0], [0], [1], [0, 0, 1, 1], [], []>} : vector<256x256xf32>, vector<256x32xf32>, vector<256x32xf32> -> vector<256x32xf32>
    %28 = tpu.reciprocal %26 {approx = true} : vector<256x1xf32> -> vector<256x1xf32>
    %29 = vector.broadcast %28 : vector<256x1xf32> to vector<256x32xf32>
    %30 = arith.mulf %27, %29 : vector<256x32xf32>
    %c0_23 = arith.constant 0 : index
    %c0_24 = arith.constant 0 : index
    %31 = memref.load %arg2[%c0_23, %c0_24] : memref<1x1xf32, #tpu.memory_space<smem>>
    %32 = vector.broadcast %31 : f32 to vector<256x32xf32>
    %33 = arith.mulf %32, %30 : vector<256x32xf32>
    %34 = arith.addf %33, %1 : vector<256x32xf32>
    %c0_25 = arith.constant 0 : index
    %c0_26 = arith.constant 0 : index
    %c0_27 = arith.constant 0 : index
    %35 = vector.load %arg11[%c0_25, %c0_26, %c0_27] : memref<1x256x32xf32, #tpu.memory_space<vmem>>, vector<1x256x32xf32>
    %36 = vector.shape_cast %35 : vector<1x256x32xf32> to vector<256x32xf32>
    %37 = vector.shape_cast %34 : vector<256x32xf32> to vector<1x256x32xf32>
    tpu.vector_store %arg11[%c0_25, %c0_26, %c0_27], %37 {strides = array<i32>} : memref<1x256x32xf32, #tpu.memory_space<vmem>>, vector<1x256x32xf32>,
    return
  }
  func.func @transform_0(%arg0: i32, %arg1: i32) -> (i32, i32) {
    %c0_i32 = arith.constant 0 : i32
    %c0_i32_0 = arith.constant 0 : i32
    %c0_i32_1 = arith.constant 0 : i32
    return %c0_i32, %c0_i32_0 : i32, i32
  }
  func.func @transform_1(%arg0: i32, %arg1: i32) -> (i32, i32, i32) {
    %c0_i32 = arith.constant 0 : i32
    %c0_i32_0 = arith.constant 0 : i32
    return %arg0, %arg1, %c0_i32 : i32, i32, i32
  }
  func.func @transform_2(%arg0: i32, %arg1: i32) -> (i32, i32, i32) {
    %c0_i32 = arith.constant 0 : i32
    %c0_i32_0 = arith.constant 0 : i32
    %c0_i32_1 = arith.constant 0 : i32
    return %arg0, %c0_i32, %c0_i32_0 : i32, i32, i32
  }
  func.func @transform_3(%arg0: i32, %arg1: i32) -> (i32, i32) {
    %c0_i32 = arith.constant 0 : i32
    %c0_i32_0 = arith.constant 0 : i32
    %c0_i32_1 = arith.constant 0 : i32
    return %c0_i32, %c0_i32_0 : i32, i32
  }
  func.func @transform_4(%arg0: i32, %arg1: i32) -> (i32, i32) {
    %c0_i32 = arith.constant 0 : i32
    %c0_i32_0 = arith.constant 0 : i32
    %c0_i32_1 = arith.constant 0 : i32
    return %c0_i32, %c0_i32_0 : i32, i32
  }
  func.func @transform_5(%arg0: i32, %arg1: i32) -> (i32, i32) {
    %c0_i32 = arith.constant 0 : i32
    %c0_i32_0 = arith.constant 0 : i32
    %c0_i32_1 = arith.constant 0 : i32
    return %c0_i32, %c0_i32_0 : i32, i32
  }
  func.func @transform_6(%arg0: i32, %arg1: i32) -> (i32, i32) {
    %c0_i32 = arith.constant 0 : i32
    %c0_i32_0 = arith.constant 0 : i32
    %c0_i32_1 = arith.constant 0 : i32
    return %c0_i32, %c0_i32_0 : i32, i32
  }
  func.func @transform_7(%arg0: i32, %arg1: i32) -> (i32, i32) {
    %c0_i32 = arith.constant 0 : i32
    %c0_i32_0 = arith.constant 0 : i32
    %c0_i32_1 = arith.constant 0 : i32
    return %c0_i32, %c0_i32_0 : i32, i32
  }
  func.func @transform_8(%arg0: i32, %arg1: i32) -> (i32, i32) {
    %c0_i32 = arith.constant 0 : i32
    %c0_i32_0 = arith.constant 0 : i32
    %c0_i32_1 = arith.constant 0 : i32
    return %c0_i32, %c0_i32_0 : i32, i32
  }
  func.func @transform_9(%arg0: i32, %arg1: i32) -> (i32, i32, i32) {
    %c0_i32 = arith.constant 0 : i32
    %c0_i32_0 = arith.constant 0 : i32
    return %arg0, %arg1, %c0_i32 : i32, i32, i32
  }
}

</mosaic_0001>

<bundles_post_ra>
// kernel: self_attention.1
= control target key start
LH: loop header
LB: loop body
LE: loop exit
PB: predicated region body
PF: predicated region fallthrough
CT: control target
= control target key end

     0   :  { %s4105_s0 = inlined_call_operand.<no memory space> [shape: f32[1,1], index: 0, kind: input, shape index: {}]   ;;  %s4106_s1 = inlined_call_operand.hbm [shape: f32[2,256,32], index: 1, kind: input, shape index: {}, may-alias: {1,2}]   ;;  %s4107_s2 = inlined_call_operand.hbm [shape: f32[2,256,32], index: 2, kind: input, shape index: {}, may-alias: {1,2}]   ;;  %s4108_s3 = inlined_call_operand.vmem [shape: f32[32,128], index: 3, kind: input, shape index: {}]   ;;  %s4109_s4 = inlined_call_operand.vmem [shape: f32[1,128], index: 4, kind: input, shape index: {}]   ;;  %s4110_s5 = inlined_call_operand.vmem [shape: f32[32,128], index: 5, kind: input, shape index: {}]   ;;  %s4111_s6 = inlined_call_operand.vmem [shape: f32[1,128], index: 6, kind: input, shape index: {}]   ;;  %s4112_s7 = inlined_call_operand.vmem [shape: f32[32,32], index: 7, kind: input, shape index: {}]   ;;  %s4113_s8 = inlined_call_operand.vmem [shape: f32[1,32], index: 8, kind: input, shape index: {}]   ;;  %s4114_s9 = inlined_call_operand.hbm [shape: f32[2,256,32], index: 9, kind: output, shape index: {}]  }
   0x1   :  { %4119 = sst [smem:[#allocation17_spill]] %s4106_s1 }
   0x2   :  { %14 = sst [smem:[#allocation2]] %s4105_s0 }
   0x3   :  { %15 = vsyncpa [#allocation4], 0 }
   0x4   :  { %17 = vsyncpa [#allocation4 + $0x1], 0 }
   0x5   :  { %18 = vsyncpa [#allocation7], 0 }
   0x6   :  { %20 = vsyncpa [#allocation7 + $0x1], 0 }
   0x7   :  { %21 = vsyncpa [#allocation5], 0 }
   0x8   :  { %23 = vsyncpa [#allocation5 + $0x1], 0  ;;  %s2795_s11 = smov 0   ;;  %s2797_s12 = smov 0  }
   0x9   :  { %s2799_s13 = smov 0   ;;  %s2801_s14 = smov 0  }
   0xa   :  { %s2803_s15 = smov 0   ;;  %s2805_s16 = smov 0  }
   0xb LB: > { %4120 = sst [smem:[#allocation12_spill]] %s2724_s13  ;;  %s2162_s0 = sadd.s32 4294967295, %s2736_s16   ;;  %s2736_s16 = sphi %s2805_s16, %s29_s16   ;;  %s2732_s15 = sphi %s2803_s15, %s4135_s15   ;;  %s2728_s14 = sphi %s2801_s14, %s4134_s14   ;;  %s2724_s13 = sphi %s2799_s13, %s4133_s13   ;;  %s2720_s12 = sphi %s2797_s12, %s4137_s12   ;;  %s2716_s11 = sphi %s2795_s11, %s4136_s11  }
   0xc   : > { %4121 = sst [smem:[#allocation13_spill]] %s2732_s15  ;;  %s2163_s17 = sadd.s32 4294967294, %s2736_s16  }
   0xd   : > { %s41_s18 = sadd.s32 1, %s2732_s15  ;;  %s71_s19 = sadd.s32 1, %s2724_s13 }
   0xe   : > { %p43_p0 = scmp.ge.s32.totalorder %s41_s18, 2  ;;  %p78_p1 = scmp.ne.s32.totalorder %s2724_s13, %s2720_s12 }
   0xf   : > { %p79_p2 = scmp.eq.s32.totalorder %s2736_s16, 0  ;;  %p84_p3 = scmp.ne.s32.totalorder %s2720_s12, %s2716_s11 }
  0x10   : > { %s4139_s18 = smov (%p43_p0, %s41_s18), 0  ;;  %p85_p5 = scmp.eq.s32.totalorder %s2162_s0, 0 }
  0x11   : > { %4122 = sst [smem:[#allocation14_spill]] %s4139_s18  ;;  %p2836_p4 = por %p79_p2, %p78_p1 }
  0x12   : > { %s66_s21 = ssub.s32 %s2732_s15, %s4139_s18  ;;  %p262_p6 = scmp.eq.s32.totalorder %s2162_s0, 1 }
  0x13   : > { %p69_p7 = scmp.eq.s32.totalorder %s66_s21, 0  ;;  %p2842_p8 = por %p85_p5, %p84_p3 }
  0x14   : > { %p2846_p9 = por %p262_p6, %p78_p1  ;;  %p268_p10 = scmp.eq.s32.totalorder %s2163_s17, 1 }
  0x15   : > { %s2851_s24 = scalar_select %p69_p7, %s2724_s13, %s71_s19  }
  0x16   : > { %p2853_p11 = por %p268_p10, %p84_p3  ;;  %p2165_p12 = scmp.ge.s32.totalorder %s2736_s16, 2 }
  0x17   : > { %4126 = sst [smem:[#allocation15_spill]] %s2851_s24  ;;  %p2309_p13 = scmp.lt.s32.totalorder %s2736_s16, 2 }
  0x18   : > { %s4127_s25 = scalar_select %p2853_p11, 1, 0 }
  0x19   : > { %s2860_s26 = sand.u32 1, %s2724_s13   ;;  %s2277_s28 = sshll.u32 %s2732_s15, 8 }
  0x1a   : > { %4128 = sst [smem:[#allocation16_spill]] %s4127_s25  ;;  %s2166_s27 = sshll.u32 %s2860_s26, 8 }
  0x1b   : > { %s4129_s1 = sld [smem:[#allocation17_spill]]  ;;  %s313_s0 = scalar_lea.vmem [#allocation3], %s2166_s27 }
  0x1c   : > { %s323_s17 = sshll.u32 %s313_s0, 4  ;;  %p2869_p0 = pnand %p2309_p13, %p2836_p4  ;;  %s324_s17 = int_to_ptr.vmem [resolvable:$true] %s323_s17 }
  0x1d   : > { %p2172_p1 = scmp.ge.s32.totalorder %s2736_s16, 1  ;;  %s310_s18 = scalar_lea.sflag [#allocation4], %s2860_s26 }
  0x1e   : > { %s2738_s15 = smov 128   ;;  %s2739_s24 = smov 8  }
  0x1f   : > { %p353_p2 = scmp.lt.s32.totalorder %s2736_s16, 3  ;;  %s337_s20 = scalar_lea.vmem [#allocation6], %s2166_s27 }
  0x20   : > { %s334_s13 = scalar_lea.sflag [#allocation7], %s2860_s26 }
  0x21   : > { %s320_s10 = scalar_lea.hbm %s4129_s1, %s2277_s28  ;;  %p354_p3 = pnand %p2172_p1, %p353_p2 }
  0x22   : > { %s321_s19 = sshll.u32 %s320_s10, 4  ;;  %s342_s10 = scalar_lea.hbm %s4107_s2, %s2277_s28  ;;  %s322_s19 = int_to_ptr.hbm [resolvable:$true] %s321_s19 }
  0x23   : > { %2301 = dma.hbm_to_vmem [thread:$0]  (!%p2869_p0), %s322_s19, 4096, %s324_s17, %s310_s18, %s2738_s15, %s2738_s15, %s2739_s24  }
  0x24   : > { %s343_s0 = sshll.u32 %s342_s10, 4  ;;  %s345_s1 = sshll.u32 %s337_s20, 4  ;;  %s344_s0 = int_to_ptr.hbm [resolvable:$true] %s343_s0  ;;  %s346_s1 = int_to_ptr.vmem [resolvable:$true] %s345_s1 }
  0x25   : > { %2304 = dma.hbm_to_vmem [thread:$0]  (!%p2869_p0), %s344_s0, 4096, %s346_s1, %s334_s13, %s2738_s15, %s2738_s15, %s2739_s24  }
  0x26   : > { %357 = sbr.rel (%p354_p3) target bundleno = 1079 (0x437), region = 56  ;;  %s2885_s25 = sand.u32 (!%p354_p3), 1, %s2720_s12  }
  0x27   : > { %s2888_s18 = sshll.u32 (!%p354_p3), %s2885_s25, 8  ;;  %s360_s28 = scalar_lea.sflag (!%p354_p3), [#allocation4], %s2885_s25 }
  0x28   : > { %s2892_s17 = scalar_lea.vmem (!%p354_p3), [#allocation3], %s2888_s18 }
  0x2b   : > { %2703 = dma.done.wait (%p2842_p8), %s360_s28, 4096  }
  0x2c   : > { %2705 = vsyncadd (%p2842_p8), %s360_s28, 4294963200  ;;  %s370_s1 = scalar_lea.sflag [#allocation7], %s2885_s25  ;;  %s2900_s13 = scalar_lea.vmem [#allocation6], %s2888_s18 }
  0x2d   : > { %2707 = dma.done.wait (%p2842_p8), %s370_s1, 4096  }
  0x2e   : > { %2709 = vsyncadd (%p2842_p8), %s370_s1, 4294963200  ;;  %v483_v0 = vld [vmem:[%s4108_s3 + $0x18] sm:$0xff]  ;;  %v482_v3 = vld [vmem:[%s4108_s3 + $0x10] sm:$0xff]  ;;  %vm488_vm0 = vcmask 261120   ;;  %s1936_s24 = sld [smem:[#allocation2]]  ;;  %s3898_s26 = scalar_lea.vmem [#allocation8], %s2888_s18 }
  0x2f   : > { %v701_v1 = vld [vmem:[%s4110_s5 + $0x18] sm:$0xff]  ;;  %597 = vmatpush.msra.mxu0 %v483_v0  ;;  %v700_v4 = vld [vmem:[%s4110_s5 + $0x10] sm:$0xff]  ;;  %v481_v6 = vld [vmem:[%s4108_s3 + $0x8] sm:$0xff]  ;;  %2280 = vmatpush.msra.mxu3 %v483_v0  ;;  %s2279_s18 = sshll.u32 %s2728_s14, 8  ;;  %s2049_s29 = sshll.u32 %s3898_s26, 4  ;;  %s2050_s29 = int_to_ptr.vmem [resolvable:$true] %s2049_s29 }
  0x30   : > { %v918_v2 = vld [vmem:[%s4112_s7 + $0x18] sm:$0xff]  ;;  %2284 = vmatpush.msra.mxu1 %v701_v1  ;;  %v917_v5 = vld [vmem:[%s4112_s7 + $0x10] sm:$0xff]  ;;  %v699_v7 = vld [vmem:[%s4110_s5 + $0x8] sm:$0xff]  ;;  %s2048_s21 = scalar_lea.hbm %s4114_s9, %s2279_s18  ;;  %s2035_s14 = scalar_lea.sflag [#allocation5], %s2885_s25 }
  0x31   : > { %2288 = vmatpush.msra.mxu2 %v918_v2  ;;  %598 = vmatpush.msra.mxu0 %v482_v3  ;;  %v916_v8 = vld [vmem:[%s4112_s7 + $0x8] sm:$0xff]  ;;  %v480_v9 = vld [vmem:[%s4108_s3] sm:$0xff]  ;;  %v418_v16 = vld [vmem:[%s2892_s17 + $0x10] sm:$0xff]  ;;  %s2051_s30 = sshll.u32 %s2048_s21, 4  ;;  %s2052_s30 = int_to_ptr.hbm [resolvable:$true] %s2051_s30 }
  0x32   : > { %2285 = vmatpush.msra.mxu1 %v700_v4  ;;  %v698_v10 = vld [vmem:[%s4110_s5] sm:$0xff]  ;;  %2281 = vmatpush.msra.mxu3 %v482_v3  ;;  %v417_v14 = vld [vmem:[%s2892_s17 + $0x8] sm:$0xff]  ;;  %v458_v17 = vld [vmem:[%s2900_s13 + $0x50] sm:$0xff]  ;;  %s2664_s22 = sshra.s32 %s2052_s30, 4  ;;  %s2665_s22 = int_to_ptr.hbm [resolvable:$true] %s2664_s22 }
  0x33   : > { %2289 = vmatpush.msra.mxu2 %v917_v5  ;;  %599 = vmatpush.msra.mxu0 %v481_v6  ;;  %v915_v11 = vld [vmem:[%s4112_s7] sm:$0xff]  ;;  %v457_v15 = vld [vmem:[%s2900_s13 + $0x48] sm:$0xff]  ;;  %v419_v18 = vld [vmem:[%s2892_s17 + $0x18] sm:$0xff]  ;;  %s2666_s10 = scalar_lea.hbm %s2665_s22, 256  ;;  %p2671_p7 = scmp.lt.s32.totalorder %s2665_s22, %s4114_s9 }
  0x34   : > { %2286 = vmatpush.msra.mxu1 %v699_v7  ;;  %v416_v12 = vld [vmem:[%s2892_s17] sm:$0xff]  ;;  %2282 = vmatpush.msra.mxu3 %v481_v6  ;;  %v459_v19 = vld [vmem:[%s2900_s13 + $0x58] sm:$0xff]  ;;  %v421_v22 = vld [vmem:[%s2892_s17 + $0x28] sm:$0xff]  ;;  %p2667_p4 = scmp.ne.s32.totalorder %s2665_s22, %s2666_s10 }
  0x35   : > { %2290 = vmatpush.msra.mxu2 %v916_v8  ;;  %v456_v13 = vld [vmem:[%s2900_s13 + $0x40] sm:$0xff]  ;;  %600 = vmatpush.msra.mxu0 %v480_v9  ;;  %v461_v23 = vld [vmem:[%s2900_s13 + $0x68] sm:$0xff]  ;;  %v422_v24 = vld [vmem:[%s2892_s17 + $0x30] sm:$0xff] }
  0x36   : > { %2287 = vmatpush.msra.mxu1 %v698_v10  ;;  %2176 = vmatmul.msk.f32.vlgmr.msra.gmra.mxu0 %vm488_vm0, %v416_v12  ;;  %v420_v20 = vld [vmem:[%s2892_s17 + $0x20] sm:$0xff]  ;;  %v462_v25 = vld [vmem:[%s2900_s13 + $0x70] sm:$0xff]  ;;  %v423_v27 = vld [vmem:[%s2892_s17 + $0x38] sm:$0xff]  ;;  %p2668_p5 = pnand %p2667_p4, %p2846_p9 }
  0x37   : > { %2291 = vmatpush.msra.mxu2 %v915_v11  ;;  %2216 = vmatmul.msk.f32.vlgmr.msra.gmra.mxu1 %vm488_vm0, %v456_v13  ;;  %v460_v21 = vld [vmem:[%s2900_s13 + $0x60] sm:$0xff]  ;;  %v463_v28 = vld [vmem:[%s2900_s13 + $0x78] sm:$0xff]  ;;  %v425_v29 = vld [vmem:[%s2892_s17 + $0x48] sm:$0xff] }
  0x38   : > { %2248 = vmatmul.msk.f32.vlgmr.msra.gmra.mxu2 %vm488_vm0, %v456_v13  ;;  %814 = vmatpush.msrb.mxu0 %v701_v1  ;;  %v424_v26 = vld [vmem:[%s2892_s17 + $0x40] sm:$0xff]  ;;  %v426_v32 = vld [vmem:[%s2892_s17 + $0x50] sm:$0xff]  ;;  %v449_v33 = vld [vmem:[%s2900_s13 + $0x8] sm:$0xff]  ;;  %p2669_p6 = pneg %p2668_p5 }
  0x39   : > { %2283 = vmatpush.msra.mxu3 %v480_v9  ;;  %v448_v30 = vld [vmem:[%s2900_s13] sm:$0xff]  ;;  %v465_v34 = vld [vmem:[%s2900_s13 + $0x88] sm:$0xff]  ;;  %v427_v35 = vld [vmem:[%s2892_s17 + $0x58] sm:$0xff] }
  0x3a   : > { %815 = vmatpush.msrb.mxu0 %v700_v4  ;;  %2184 = vmatmul.msk.f32.vlgmr.msra.gmra.mxu3 %vm488_vm0, %v424_v26  ;;  %v464_v31 = vld [vmem:[%s2900_s13 + $0x80] sm:$0xff]  ;;  %v3001_v36 = vld [vmem:[%s2900_s13 + $0x10] sm:$0xff]  ;;  %v3011_v39 = vld [vmem:[%s2900_s13 + $0x18] sm:$0xff] }
  0x3b   : > { %v466_v37 = vld [vmem:[%s2900_s13 + $0x90] sm:$0xff]  ;;  %v428_v38 = vld [vmem:[%s2892_s17 + $0x60] sm:$0xff]  ;;  %v467_v40 = vld [vmem:[%s2900_s13 + $0x98] sm:$0xff] }
  0x3c   : > { %816 = vmatpush.msrb.mxu0 %v699_v7  ;;  %v3019_v41 = vld [vmem:[%s2900_s13 + $0x20] sm:$0xff]  ;;  %v429_v43 = vld [vmem:[%s2892_s17 + $0x68] sm:$0xff]  ;;  %v430_v46 = vld [vmem:[%s2892_s17 + $0x70] sm:$0xff] }
  0x3d   : > { %v468_v42 = vld [vmem:[%s2900_s13 + $0xa0] sm:$0xff]  ;;  %v3029_v44 = vld [vmem:[%s2900_s13 + $0x28] sm:$0xff]  ;;  %v3039_v47 = vld [vmem:[%s2900_s13 + $0x30] sm:$0xff] }
  0x3e   : > { %2177 = vmatmul.msk.f32.gmra.mxu0 %vm488_vm0, %v417_v14  ;;  %v469_v45 = vld [vmem:[%s2900_s13 + $0xa8] sm:$0xff]  ;;  %v470_v48 = vld [vmem:[%s2900_s13 + $0xb0] sm:$0xff]  ;;  %v431_v49 = vld [vmem:[%s2892_s17 + $0x78] sm:$0xff] }
  0x3f   : > { %2217 = vmatmul.msk.f32.gmra.mxu1 %vm488_vm0, %v457_v15  ;;  %817 = vmatpush.msrb.mxu0 %v698_v10  ;;  %v3049_v50 = vld [vmem:[%s2900_s13 + $0x38] sm:$0xff]  ;;  %v432_v52 = vld [vmem:[%s2892_s17 + $0x80] sm:$0xff]  ;;  %v433_v56 = vld [vmem:[%s2892_s17 + $0x88] sm:$0xff] }
  0x40   : > { %2249 = vmatmul.msk.f32.gmra.mxu2 %vm488_vm0, %v457_v15  ;;  %v471_v51 = vld [vmem:[%s2900_s13 + $0xb8] sm:$0xff]  ;;  %v472_v55 = vld [vmem:[%s2900_s13 + $0xc0] sm:$0xff]  ;;  %v473_v60 = vld [vmem:[%s2900_s13 + $0xc8] sm:$0xff] }
  0x41   : > { %935 = vmatpush.msra.mxu0 %v918_v2  ;;  %v434_v61 = vld [vmem:[%s2892_s17 + $0x90] sm:$0xff]  ;;  %v435_v2 = vld [vmem:[%s2892_s17 + $0x98] sm:$0xff]  ;;  %v436_v7 = vld [vmem:[%s2892_s17 + $0xa0] sm:$0xff] }
  0x42   : > { %2185 = vmatmul.msk.f32.gmra.mxu3 %vm488_vm0, %v425_v29  ;;  %v474_v1 = vld [vmem:[%s2900_s13 + $0xd0] sm:$0xff]  ;;  %v475_v6 = vld [vmem:[%s2900_s13 + $0xd8] sm:$0xff]  ;;  %v437_v12 = vld [vmem:[%s2892_s17 + $0xa8] sm:$0xff] }
  0x43   : > { %936 = vmatpush.msra.mxu0 %v917_v5  ;;  %v440_v29 = vld [vmem:[%s2892_s17 + $0xc0] sm:$0xff] }
  0x45   : > { %937 = vmatpush.msra.mxu0 %v916_v8 }
  0x46   : > { %2178 = vmatmul.msk.f32.gmra.mxu0 %vm488_vm0, %v418_v16  ;;  %v477_v16 = vld [vmem:[%s2900_s13 + $0xe8] sm:$0xff] }
  0x47   : > { %2218 = vmatmul.msk.f32.gmra.mxu1 %vm488_vm0, %v458_v17  ;;  %938 = vmatpush.msra.mxu0 %v915_v11  ;;  %v476_v11 = vld [vmem:[%s2900_s13 + $0xe0] sm:$0xff] }
  0x48   : > { %2250 = vmatmul.msk.f32.gmra.mxu2 %vm488_vm0, %v458_v17  ;;  %v438_v17 = vld [vmem:[%s2892_s17 + $0xb0] sm:$0xff] }
  0x4a   : > { %2186 = vmatmul.msk.f32.gmra.mxu3 %vm488_vm0, %v426_v32 }
  0x4e   : > { %2179 = vmatmul.msk.f32.gmra.mxu0 %vm488_vm0, %v419_v18 }
  0x4f   : > { %2219 = vmatmul.msk.f32.gmra.mxu1 %vm488_vm0, %v459_v19 }
  0x50   : > { %2251 = vmatmul.msk.f32.gmra.mxu2 %vm488_vm0, %v459_v19 }
  0x52   : > { %2187 = vmatmul.msk.f32.gmra.mxu3 %vm488_vm0, %v427_v35 }
  0x56   : > { %2180 = vmatmul.msk.f32.gmra.mxu0 %vm488_vm0, %v420_v20 }
  0x57   : > { %2220 = vmatmul.msk.f32.gmra.mxu1 %vm488_vm0, %v460_v21 }
  0x58   : > { %2252 = vmatmul.msk.f32.gmra.mxu2 %vm488_vm0, %v460_v21  ;;  %v478_v21 = vld [vmem:[%s2900_s13 + $0xf0] sm:$0xff] }
  0x5a   : > { %2188 = vmatmul.msk.f32.gmra.mxu3 %vm488_vm0, %v428_v38 }
  0x5e   : > { %2181 = vmatmul.msk.f32.gmra.mxu0 %vm488_vm0, %v421_v22  ;;  %v439_v22 = vld [vmem:[%s2892_s17 + $0xb8] sm:$0xff] }
  0x5f   : > { %2221 = vmatmul.msk.f32.gmra.mxu1 %vm488_vm0, %v461_v23 }
  0x60   : > { %2253 = vmatmul.msk.f32.gmra.mxu2 %vm488_vm0, %v461_v23 }
  0x62   : > { %2189 = vmatmul.msk.f32.gmra.mxu3 %vm488_vm0, %v429_v43 }
  0x66   : > { %2182 = vmatmul.msk.f32.gmra.mxu0 %vm488_vm0, %v422_v24 }
  0x67   : > { %2222 = vmatmul.msk.f32.gmra.mxu1 %vm488_vm0, %v462_v25 }
  0x68   : > { %2254 = vmatmul.msk.f32.gmra.mxu2 %vm488_vm0, %v462_v25  ;;  %v3142_v25 = vld [vmem:[%s4111_s6] ss:$0 sm:$0xff] }
  0x6a   : > { %2190 = vmatmul.msk.f32.gmra.mxu3 %vm488_vm0, %v430_v46 }
  0x6e   : > { %2183 = vmatmul.msk.f32.gmra.mxu0 %vm488_vm0, %v423_v27  ;;  %v479_v27 = vld [vmem:[%s2900_s13 + $0xf8] sm:$0xff]  ;;  %s2670_s13 = scalar_lea.hbm %s4114_s9, 512 }
  0x6f   : > { %2223 = vmatmul.msk.f32.gmra.mxu1 %vm488_vm0, %v463_v28  ;;  %p2672_p8 = scmp.lt.s32.totalorder %s2670_s13, %s2666_s10 }
  0x70   : > { %2255 = vmatmul.msk.f32.gmra.mxu2 %vm488_vm0, %v463_v28 }
  0x71   : > { %p2673_p10 = por %p2672_p8, %p2671_p7 }
  0x72   : > { %2191 = vmatmul.msk.f32.gmra.mxu3 %vm488_vm0, %v431_v49 }
  0x73   : > { %p2674_p13 = pnand %p2673_p10, %p2669_p6 }
  0x76   : > { %2208 = vmatmul.msk.f32.vlgmr.msrb.gmra.mxu0 %vm488_vm0, %v448_v30 }
  0x77   : > { %2224 = vmatmul.msk.f32.gmra.mxu1 %vm488_vm0, %v464_v31 }
  0x78   : > { %2256 = vmatmul.msk.f32.gmra.mxu2 %vm488_vm0, %v464_v31 }
  0x7a   : > { %2192 = vmatmul.msk.f32.gmra.mxu3 %vm488_vm0, %v432_v52 }
  0x7e   : > { %2209 = vmatmul.msk.f32.gmra.mxu0 %vm488_vm0, %v449_v33 }
  0x7f   : > { %2225 = vmatmul.msk.f32.gmra.mxu1 %vm488_vm0, %v465_v34 }
  0x80   : > { %2257 = vmatmul.msk.f32.gmra.mxu2 %vm488_vm0, %v465_v34  ;;  %v441_v34 = vld [vmem:[%s2892_s17 + $0xc8] sm:$0xff] }
  0x82   : > { %2193 = vmatmul.msk.f32.gmra.mxu3 %vm488_vm0, %v433_v56  ;;  %v444_v56 = vld [vmem:[%s2892_s17 + $0xe0] sm:$0xff] }
  0x86   : > { %2210 = vmatmul.msk.f32.gmra.mxu0 %vm488_vm0, %v3001_v36 }
  0x87   : > { %2226 = vmatmul.msk.f32.gmra.mxu1 %vm488_vm0, %v466_v37 }
  0x88   : > { %2258 = vmatmul.msk.f32.gmra.mxu2 %vm488_vm0, %v466_v37 }
  0x8a   : > { %2194 = vmatmul.msk.f32.gmra.mxu3 %vm488_vm0, %v434_v61 }
  0x8e   : > { %2211 = vmatmul.msk.f32.gmra.mxu0 %vm488_vm0, %v3011_v39 }
  0x8f   : > { %2227 = vmatmul.msk.f32.gmra.mxu1 %vm488_vm0, %v467_v40 }
  0x90   : > { %2259 = vmatmul.msk.f32.gmra.mxu2 %vm488_vm0, %v467_v40 }
  0x92   : > { %2195 = vmatmul.msk.f32.gmra.mxu3 %vm488_vm0, %v435_v2 }
  0x96   : > { %2212 = vmatmul.msk.f32.gmra.mxu0 %vm488_vm0, %v3019_v41 }
  0x97   : > { %2228 = vmatmul.msk.f32.gmra.mxu1 %vm488_vm0, %v468_v42 }
  0x98   : > { %2260 = vmatmul.msk.f32.gmra.mxu2 %vm488_vm0, %v468_v42 }
  0x9a   : > { %2196 = vmatmul.msk.f32.gmra.mxu3 %vm488_vm0, %v436_v7  ;;  %v445_v7 = vld [vmem:[%s2892_s17 + $0xe8] sm:$0xff] }
  0x9e   : > { %2213 = vmatmul.msk.f32.gmra.mxu0 %vm488_vm0, %v3029_v44 }
  0x9f   : > { %2229 = vmatmul.msk.f32.gmra.mxu1 %vm488_vm0, %v469_v45 }
  0xa0   : > { %2261 = vmatmul.msk.f32.gmra.mxu2 %vm488_vm0, %v469_v45 }
  0xa2   : > { %2197 = vmatmul.msk.f32.gmra.mxu3 %vm488_vm0, %v437_v12 }
  0xa6   : > { %2214 = vmatmul.msk.f32.gmra.mxu0 %vm488_vm0, %v3039_v47 }
  0xa7   : > { %2230 = vmatmul.msk.f32.gmra.mxu1 %vm488_vm0, %v470_v48 }
  0xa8   : > { %2262 = vmatmul.msk.f32.gmra.mxu2 %vm488_vm0, %v470_v48 }
  0xaa   : > { %2198 = vmatmul.msk.f32.gmra.mxu3 %vm488_vm0, %v438_v17 }
  0xae   : > { %2215 = vmatmul.msk.f32.gmra.mxu0 %vm488_vm0, %v3049_v50 }
  0xaf   : > { %2231 = vmatmul.msk.f32.gmra.mxu1 %vm488_vm0, %v471_v51 }
  0xb0   : > { %2263 = vmatmul.msk.f32.gmra.mxu2 %vm488_vm0, %v471_v51 }
  0xb2   : > { %2199 = vmatmul.msk.f32.gmra.mxu3 %vm488_vm0, %v439_v22  ;;  %v447_v22 = vld [vmem:[%s2892_s17 + $0xf8] sm:$0xff] }
  0xb3   : > { %v3058_v53 = vpop.f32.mrf.mxu0 }
  0xb4   : > { %v3060_v54 = vpop.f32.mrf.mxu1 }
  0xb5   : > { %v844_v51 = vadd.f32 %v3142_v25, %v3060_v54 }
  0xb6   : > { %2240 = vmatmul.msk.f32.vlgmr.msra.gmra.mxu0 %vm488_vm0, %v448_v30 }
  0xb7   : > { %2232 = vmatmul.msk.f32.gmra.mxu1 %vm488_vm0, %v472_v55 }
  0xb8   : > { %2264 = vmatmul.msk.f32.gmra.mxu2 %vm488_vm0, %v472_v55 }
  0xba   : > { %2200 = vmatmul.msk.f32.gmra.mxu3 %vm488_vm0, %v440_v29 }
  0xbb   : > { %v3068_v57 = vpop.f32.mrf.mxu2  ;;  %v3070_v58 = vpop.f32.mrf.mxu0 }
  0xbc   : > { %v3072_v59 = vpop.f32.mrf.mxu1 }
  0xbd   : > { %v3167_v40 = vpop.f32.mrf.mxu3  ;;  %v847_v48 = vadd.f32 %v3142_v25, %v3072_v59  ;;  %v3196_v59 = vld [vmem:[%s4113_s8] ss:$0 sm:$0xff] }
  0xbe   : > { %2241 = vmatmul.msk.f32.gmra.mxu0 %vm488_vm0, %v449_v33 }
  0xbf   : > { %2233 = vmatmul.msk.f32.gmra.mxu1 %vm488_vm0, %v473_v60 }
  0xc0   : > { %2265 = vmatmul.msk.f32.gmra.mxu2 %vm488_vm0, %v473_v60 }
  0xc2   : > { %2201 = vmatmul.msk.f32.gmra.mxu3 %vm488_vm0, %v441_v34 }
  0xc3   : > { %v3080_v62 = vpop.f32.mrf.mxu2  ;;  %v3082_v63 = vpop.f32.mrf.mxu0 }
  0xc4   : > { %v3084_v0 = vpop.f32.mrf.mxu1 }
  0xc5   : > { %v3184_v49 = vpop.f32.mrf.mxu3 }
  0xc6   : > { %2242 = vmatmul.msk.f32.gmra.mxu0 %vm488_vm0, %v3001_v36 }
  0xc7   : > { %2234 = vmatmul.msk.f32.gmra.mxu1 %vm488_vm0, %v474_v1 }
  0xc8   : > { %2266 = vmatmul.msk.f32.gmra.mxu2 %vm488_vm0, %v474_v1 }
  0xcb   : > { %v3093_v3 = vpop.f32.mrf.mxu2  ;;  %v3095_v4 = vpop.f32.mrf.mxu0 }
  0xcc   : > { %v852_v5 = vpop.f32.mrf.mxu1 }
  0xcd   : > { %v853_v42 = vadd.f32 %v3142_v25, %v852_v5 }
  0xce   : > { %2243 = vmatmul.msk.f32.gmra.mxu0 %vm488_vm0, %v3011_v39 }
  0xcf   : > { %2235 = vmatmul.msk.f32.gmra.mxu1 %vm488_vm0, %v475_v6 }
  0xd0   : > { %2267 = vmatmul.msk.f32.gmra.mxu2 %vm488_vm0, %v475_v6 }
  0xd3   : > { %v3104_v8 = vpop.f32.mrf.mxu2  ;;  %v3106_v9 = vpop.f32.mrf.mxu0 }
  0xd4   : > { %v855_v10 = vpop.f32.mrf.mxu1 }
  0xd5   : > { %v856_v37 = vadd.f32 %v3142_v25, %v855_v10  ;;  %v974_v10 = vadd.f32 %v3196_v59, %v3104_v8  ;;  %v965_v8 = vadd.f32 %v3196_v59, %v3068_v57 }
  0xd6   : > { %2244 = vmatmul.msk.f32.gmra.mxu0 %vm488_vm0, %v3019_v41  ;;  %v442_v41 = vld [vmem:[%s2892_s17 + $0xd0] sm:$0xff] }
  0xd7   : > { %2236 = vmatmul.msk.f32.gmra.mxu1 %vm488_vm0, %v476_v11  ;;  %2202 = vmatmul.msk.f32.gmra.mxu3 %vm488_vm0, %v442_v41 }
  0xd8   : > { %2268 = vmatmul.msk.f32.gmra.mxu2 %vm488_vm0, %v476_v11  ;;  %v971_v11 = vadd.f32 %v3196_v59, %v3093_v3 }
  0xdb   : > { %v3115_v13 = vpop.f32.mrf.mxu2  ;;  %v3117_v14 = vpop.f32.mrf.mxu0 }
  0xdc   : > { %v858_v15 = vpop.f32.mrf.mxu1  ;;  %v977_v6 = vadd.f32 %v3196_v59, %v3115_v13 }
  0xdd   : > { %v859_v35 = vadd.f32 %v3142_v25, %v858_v15  ;;  %v968_v15 = vadd.f32 %v3196_v59, %v3080_v62 }
  0xde   : > { %2245 = vmatmul.msk.f32.gmra.mxu0 %vm488_vm0, %v3029_v44  ;;  %v850_v44 = vadd.f32 %v3142_v25, %v3084_v0  ;;  %v3201_v0 = vpop.f32.mrf.mxu3 }
  0xdf   : > { %2237 = vmatmul.msk.f32.gmra.mxu1 %vm488_vm0, %v477_v16 }
  0xe0   : > { %2269 = vmatmul.msk.f32.gmra.mxu2 %vm488_vm0, %v477_v16 }
  0xe3   : > { %v3126_v18 = vpop.f32.mrf.mxu2  ;;  %v3128_v19 = vpop.f32.mrf.mxu0 }
  0xe4   : > { %v861_v20 = vpop.f32.mrf.mxu1  ;;  %v980_v1 = vadd.f32 %v3196_v59, %v3126_v18  ;;  %v446_v18 = vld [vmem:[%s2892_s17 + $0xf0] sm:$0xff] }
  0xe5   : > { %v862_v31 = vadd.f32 %v3142_v25, %v861_v20 }
  0xe6   : > { %2246 = vmatmul.msk.f32.gmra.mxu0 %vm488_vm0, %v3039_v47  ;;  %v443_v47 = vld [vmem:[%s2892_s17 + $0xd8] sm:$0xff]  ;;  %v3221_v17 = vpop.f32.mrf.mxu3 }
  0xe7   : > { %2238 = vmatmul.msk.f32.gmra.mxu1 %vm488_vm0, %v478_v21  ;;  %2203 = vmatmul.msk.f32.gmra.mxu3 %vm488_vm0, %v443_v47 }
  0xe8   : > { %2270 = vmatmul.msk.f32.gmra.mxu2 %vm488_vm0, %v478_v21 }
  0xeb   : > { %v982_v23 = vpop.f32.mrf.mxu2  ;;  %v3137_v24 = vpop.f32.mrf.mxu0 }
  0xec   : > { %v864_v26 = vpop.f32.mrf.mxu1  ;;  %v983_v61 = vadd.f32 %v3196_v59, %v982_v23 }
  0xed   : > { %v865_v28 = vadd.f32 %v3142_v25, %v864_v26 }
  0xee   : > { %2247 = vmatmul.msk.f32.gmra.mxu0 %vm488_vm0, %v3049_v50  ;;  %v3233_v62 = vpop.f32.mrf.mxu3 }
  0xef   : > { %2239 = vmatmul.msk.f32.gmra.mxu1 %vm488_vm0, %v479_v27  ;;  %1036 = vmatpush.xpose.msrb.mxu3 %v865_v28 }
  0xf0   : > { %2271 = vmatmul.msk.f32.gmra.mxu2 %vm488_vm0, %v479_v27  ;;  %2204 = vmatmul.msk.f32.gmra.mxu3 %vm488_vm0, %v444_v56 }
  0xf3   : > { %v985_v30 = vpop.f32.mrf.mxu2  ;;  %v3153_v32 = vpop.f32.mrf.mxu0  ;;  %1037 = vmatpush.xpose.msrb.mxu3 %v862_v31 }
  0xf4   : > { %v3155_v33 = vpop.f32.mrf.mxu1  ;;  %v986_v60 = vadd.f32 %v3196_v59, %v985_v30 }
  0xf6   : > { %1646 = vmatpush.msrb.mxu1 %v986_v60  ;;  %v3243_v29 = vpop.f32.mrf.mxu3 }
  0xf7   : > { %1038 = vmatpush.xpose.msrb.mxu3 %v859_v35 }
  0xf8   : > { %1647 = vmatpush.msrb.mxu1 %v983_v61  ;;  %2205 = vmatmul.msk.f32.gmra.mxu3 %vm488_vm0, %v445_v7  ;;  %v820_v61 = vadd.f32 %v3142_v25, %v3153_v32 }
  0xfa   : > { %1648 = vmatpush.msrb.mxu1 %v980_v1 }
  0xfb   : > { %v3160_v36 = vpop.f32.mrf.mxu2  ;;  %v3163_v38 = vpop.f32.mrf.mxu0  ;;  %1039 = vmatpush.xpose.msrb.mxu3 %v856_v37 }
  0xfc   : > { %v3165_v39 = vpop.f32.mrf.mxu1  ;;  %1649 = vmatpush.msrb.mxu1 %v977_v6 }
  0xfe   : > { %1650 = vmatpush.msrb.mxu1 %v974_v10  ;;  %v3251_v37 = vpop.f32.mrf.mxu3 }
  0xff   : > { %1040 = vmatpush.xpose.msrb.mxu3 %v853_v42 }
 0x100   : > { %1651 = vmatpush.msrb.mxu1 %v971_v11  ;;  %2206 = vmatmul.msk.f32.gmra.mxu3 %vm488_vm0, %v446_v18 }
 0x102   : > { %1652 = vmatpush.msrb.mxu1 %v968_v15 }
 0x103   : > { %v3172_v43 = vpop.f32.mrf.mxu2  ;;  %v3176_v45 = vpop.f32.mrf.mxu0  ;;  %1041 = vmatpush.xpose.msrb.mxu3 %v850_v44 }
 0x104   : > { %v3178_v46 = vpop.f32.mrf.mxu1  ;;  %1653 = vmatpush.msrb.mxu1 %v965_v8  ;;  %v826_v47 = vadd.f32 %v3142_v25, %v3176_v45 }
 0x106   : > { %v3262_v56 = vpop.f32.mrf.mxu3 }
 0x107   : > { %1042 = vmatpush.xpose.msrb.mxu3 %v847_v48 }
 0x108   : > { %2207 = vmatmul.msk.f32.gmra.mxu3 %vm488_vm0, %v447_v22 }
 0x10b   : > { %v3186_v50 = vpop.f32.mrf.mxu2  ;;  %v828_v52 = vpop.f32.mrf.mxu0  ;;  %1043 = vmatpush.xpose.msrb.mxu3 %v844_v51  ;;  %v823_v51 = vadd.f32 %v3142_v25, %v3163_v38 }
 0x10c   : > { %v3190_v55 = vpop.f32.mrf.mxu1  ;;  %v829_v42 = vadd.f32 %v3142_v25, %v828_v52  ;;  %v3269_v52 = vld [vmem:[%s4109_s4] ss:$0 sm:$0xff] }
 0x10d   : > { %v3273_v45 = vadd.f32 %v3269_v52, %v3058_v53  ;;  %v3280_v32 = vadd.f32 %v3269_v52, %v3070_v58  ;;  %v3287_v53 = vadd.f32 %v3269_v52, %v3082_v63  ;;  %v3294_v58 = vadd.f32 %v3269_v52, %v3095_v4 }
 0x10e   : > { %v3276_v38 = vpop.f32.mrf.mxu3  ;;  %v3299_v22 = vadd.f32 %v3269_v52, %v3106_v9 }
 0x113   : > { %v3203_v54 = vpop.f32.mrf.mxu2  ;;  %v831_v2 = vpop.f32.mrf.mxu0 }
 0x114   : > { %v3207_v5 = vpop.f32.mrf.mxu1  ;;  %v832_v35 = vadd.f32 %v3142_v25, %v831_v2 }
 0x116   : > { %v3283_v10 = vpop.f32.mrf.mxu3 }
 0x11b   : > { %v3217_v12 = vpop.f32.mrf.mxu2  ;;  %v834_v16 = vpop.f32.mrf.mxu0 }
 0x11c   : > { %v3223_v13 = vpop.f32.mrf.mxu1  ;;  %v835_v31 = vadd.f32 %v3142_v25, %v834_v16 }
 0x11e   : > { %v3290_v16 = vpop.f32.mrf.mxu3 }
 0x123   : > { %v3229_v3 = vpop.f32.mrf.mxu2  ;;  %v837_v20 = vpop.f32.mrf.mxu0 }
 0x124   : > { %v3231_v21 = vpop.f32.mrf.mxu1  ;;  %v838_v28 = vadd.f32 %v3142_v25, %v837_v20 }
 0x126   : > { %v3301_v63 = vpop.f32.mrf.mxu3 }
 0x12b   : > { %v3237_v23 = vpop.f32.mrf.mxu2  ;;  %v840_v26 = vpop.f32.mrf.mxu0 }
 0x12c   : > { %v3239_v27 = vpop.f32.mrf.mxu1  ;;  %v841_v57 = vadd.f32 %v3142_v25, %v840_v26 }
 0x12e   : > { %1044 = vmatpush.xpose.msrb.mxu3 %v841_v57 }
 0x132   : > { %1045 = vmatpush.xpose.msrb.mxu3 %v838_v28 }
 0x133   : > { %v3245_v30 = vpop.f32.mrf.mxu2 }
 0x134   : > { %v3248_v34 = vpop.f32.mrf.mxu1 }
 0x136   : > { %1046 = vmatpush.xpose.msrb.mxu3 %v835_v31  ;;  %v3308_v31 = vadd.f32 %v3269_v52, %v3117_v14 }
 0x13a   : > { %1047 = vmatpush.xpose.msrb.mxu3 %v832_v35 }
 0x13b   : > { %v3253_v41 = vpop.f32.mrf.mxu2 }
 0x13c   : > { %v3256_v44 = vpop.f32.mrf.mxu1 }
 0x13e   : > { %1048 = vmatpush.xpose.msrb.mxu3 %v829_v42 }
 0x142   : > { %1049 = vmatpush.xpose.msrb.mxu3 %v826_v47  ;;  %v3313_v47 = vpop.f32.mrf.mxu3 }
 0x143   : > { %v1015_v48 = vpop.f32.mrf.mxu2 }
 0x144   : > { %v897_v60 = vpop.f32.mrf.mxu1 }
 0x146   : > { %1050 = vmatpush.xpose.msrb.mxu3 %v823_v51 }
 0x14a   : > { %1051 = vmatpush.xpose.msrb.mxu3 %v820_v61 }
 0x14b   : > { %v1018_v1 = vpop.f32.mrf.mxu2 }
 0x14c   : > { %v900_v2 = vpop.f32.mrf.mxu1 }
 0x14d   : > { %1052 = vmatmul.f32.vlgmr.msrb.gmra.mxu3 %v3273_v45 }
 0x153   : > { %v1021_v6 = vpop.f32.mrf.mxu2 }
 0x154   : > { %v903_v7 = vpop.f32.mrf.mxu1 }
 0x155   : > { %1055 = vmatmul.f32.gmra.mxu3 %v3280_v32  ;;  %v904_v14 = vadd.f32 %v3142_v25, %v903_v7  ;;  %v895_v7 = vadd.f32 %v3142_v25, %v3256_v44  ;;  %v998_v44 = vadd.f32 %v3196_v59, %v3203_v54  ;;  %v886_v54 = vadd.f32 %v3142_v25, %v3231_v21 }
 0x156   : > { %v3386_v21 = vadd.f32 %v3269_v52, %v3201_v0  ;;  %v871_v0 = vadd.f32 %v3142_v25, %v3165_v39 }
 0x15b   : > { %v1024_v11 = vpop.f32.mrf.mxu2 }
 0x15c   : > { %v906_v15 = vpop.f32.mrf.mxu1  ;;  %v1025_v61 = vadd.f32 %v3196_v59, %v1024_v11  ;;  %v1016_v11 = vadd.f32 %v3196_v59, %v1015_v48  ;;  %v1007_v48 = vadd.f32 %v3196_v59, %v3237_v23 }
 0x15d   : > { %1058 = vmatmul.f32.gmra.mxu3 %v3287_v53  ;;  %v907_v42 = vadd.f32 %v3142_v25, %v906_v15  ;;  %v1019_v15 = vadd.f32 %v3196_v59, %v1018_v1  ;;  %v1010_v1 = vadd.f32 %v3196_v59, %v3245_v30  ;;  %v892_v30 = vadd.f32 %v3142_v25, %v3248_v34 }
 0x15e   : > { %v992_v34 = vadd.f32 %v3196_v59, %v3172_v43  ;;  %v883_v43 = vadd.f32 %v3142_v25, %v3223_v13 }
 0x163   : > { %v1027_v8 = vpop.f32.mrf.mxu2 }
 0x164   : > { %v909_v18 = vpop.f32.mrf.mxu1  ;;  %v1028_v51 = vadd.f32 %v3196_v59, %v1027_v8  ;;  %v3328_v8 = vpop.f32.mrf.mxu3 }
 0x165   : > { %1061 = vmatmul.f32.gmra.mxu3 %v3294_v58  ;;  %v910_v28 = vadd.f32 %v3142_v25, %v909_v18  ;;  %v1022_v18 = vadd.f32 %v3196_v59, %v1021_v6  ;;  %v1013_v6 = vadd.f32 %v3196_v59, %v3253_v41  ;;  %v1004_v41 = vadd.f32 %v3196_v59, %v3229_v3 }
 0x166   : > { %v995_v3 = vadd.f32 %v3196_v59, %v3186_v50  ;;  %v3375_v50 = vadd.f32 %v3269_v52, %v3184_v49  ;;  %v877_v49 = vadd.f32 %v3142_v25, %v3190_v55 }
 0x16b   : > { %v1030_v20 = vpop.f32.mrf.mxu2 }
 0x16c   : > { %v912_v26 = vpop.f32.mrf.mxu1  ;;  %v1031_v9 = vadd.f32 %v3196_v59, %v1030_v20  ;;  %v3322_v20 = vadd.f32 %v3269_v52, %v3128_v19  ;;  %v898_v19 = vadd.f32 %v3142_v25, %v897_v60  ;;  %v3346_v60 = vpop.f32.mrf.mxu0 }
 0x16d   : > { %v913_v57 = vadd.f32 %v3142_v25, %v912_v26  ;;  %1064 = vmatmul.f32.gmra.mxu3 %v3299_v22  ;;  %v901_v26 = vadd.f32 %v3142_v25, %v900_v2  ;;  %v3337_v2 = vadd.f32 %v3269_v52, %v3137_v24  ;;  %v1001_v24 = vadd.f32 %v3196_v59, %v3217_v12  ;;  %v3352_v23 = vpop.f32.mrf.mxu3 }
 0x16e   : > { %v889_v12 = vadd.f32 %v3142_v25, %v3239_v27 }
 0x16f   : > { %1149 = vmatpush.xpose.msrb.mxu0 %v913_v57  ;;  %v3358_v57 = vadd.f32 %v3269_v52, %v3167_v40  ;;  %v989_v40 = vadd.f32 %v3196_v59, %v3160_v36  ;;  %v880_v36 = vadd.f32 %v3142_v25, %v3207_v5  ;;  %v3397_v5 = vadd.f32 %v3269_v52, %v3221_v17 }
 0x173   : > { %v1033_v4 = vpop.f32.mrf.mxu2  ;;  %1150 = vmatpush.xpose.msrb.mxu0 %v910_v28 }
 0x174   : > { %v1034_v35 = vadd.f32 %v3196_v59, %v1033_v4  ;;  %v3367_v28 = vpop.f32.mrf.mxu0 }
 0x175   : > { %1067 = vmatmul.f32.gmra.mxu3 %v3308_v31  ;;  %v3377_v27 = vpop.f32.mrf.mxu3 }
 0x176   : > { %1759 = vmatpush.msrb.mxu2 %v1034_v35 }
 0x177   : > { %1151 = vmatpush.xpose.msrb.mxu0 %v907_v42 }
 0x178   : > { %1760 = vmatpush.msrb.mxu2 %v1031_v9  ;;  %v874_v9 = vadd.f32 %v3142_v25, %v3178_v46  ;;  %v3408_v46 = vadd.f32 %v3269_v52, %v3233_v62 }
 0x17a   : > { %1761 = vmatpush.msrb.mxu2 %v1028_v51  ;;  %v868_v51 = vadd.f32 %v3142_v25, %v3155_v33  ;;  %v3422_v33 = vadd.f32 %v3269_v52, %v3251_v37 }
 0x17b   : > { %1152 = vmatpush.xpose.msrb.mxu0 %v904_v14 }
 0x17c   : > { %1762 = vmatpush.msrb.mxu2 %v1025_v61  ;;  %v946_v4 = vpop.f32.mrf.mxu0  ;;  %v3416_v61 = vadd.f32 %v3269_v52, %v3243_v29 }
 0x17d   : > { %1070 = vmatmul.f32.gmra.mxu3 %v3322_v20  ;;  %v3390_v35 = vpop.f32.mrf.mxu3 }
 0x17e   : > { %1763 = vmatpush.msrb.mxu2 %v1022_v18 }
 0x17f   : > { %1153 = vmatpush.xpose.msrb.mxu0 %v901_v26  ;;  %v947_v26 = vadd.f32 %v3196_v59, %v946_v4 }
 0x180   : > { %1764 = vmatpush.msrb.mxu2 %v1019_v15 }
 0x182   : > { %1765 = vmatpush.msrb.mxu2 %v1016_v11  ;;  %v651_v11 = vadd.f32 %v3269_v52, %v3276_v38 }
 0x183   : > { %1154 = vmatpush.xpose.msrb.mxu0 %v898_v19  ;;  %v654_v19 = vadd.f32 %v3269_v52, %v3283_v10  ;;  %v663_v10 = vadd.f32 %v3269_v52, %v3313_v47 }
 0x184   : > { %1766 = vmatpush.msrb.mxu2 %v1013_v6  ;;  %v949_v13 = vpop.f32.mrf.mxu0  ;;  %v941_v6 = vadd.f32 %v3196_v59, %v3346_v60 }
 0x185   : > { %1073 = vmatmul.f32.gmra.mxu3 %v3337_v2  ;;  %v3402_v42 = vpop.f32.mrf.mxu3 }
 0x186   : > { %1767 = vmatpush.msrb.mxu2 %v1010_v1  ;;  %v657_v1 = vadd.f32 %v3269_v52, %v3290_v16  ;;  %v666_v16 = vadd.f32 %v3269_v52, %v3328_v8  ;;  %v3473_v8 = vadd.f32 %v3269_v52, %v3390_v35 }
 0x187   : > { %1155 = vmatpush.xpose.msrb.mxu0 %v895_v7  ;;  %v3481_v7 = vadd.f32 %v3269_v52, %v3402_v42 }
 0x188   : > { %1768 = vmatpush.msrb.mxu2 %v1007_v48 }
 0x18a   : > { %1769 = vmatpush.msrb.mxu2 %v1004_v41 }
 0x18b   : > { %1156 = vmatpush.xpose.msrb.mxu0 %v892_v30 }
 0x18c   : > { %1770 = vmatpush.msrb.mxu2 %v1001_v24  ;;  %v952_v55 = vpop.f32.mrf.mxu0 }
 0x18d   : > { %1076 = vmatmul.f32.gmra.mxu3 %v3358_v57  ;;  %v3412_v39 = vpop.f32.mrf.mxu3  ;;  %v953_v15 = vadd.f32 %v3196_v59, %v952_v55 }
 0x18e   : > { %1771 = vmatpush.msrb.mxu2 %v998_v44  ;;  %v3489_v60 = vadd.f32 %v3269_v52, %v3412_v39 }
 0x18f   : > { %1157 = vmatpush.xpose.msrb.mxu0 %v889_v12 }
 0x190   : > { %1772 = vmatpush.msrb.mxu2 %v995_v3 }
 0x192   : > { %1773 = vmatpush.msrb.mxu2 %v992_v34 }
 0x193   : > { %1158 = vmatpush.xpose.msrb.mxu0 %v886_v54 }
 0x194   : > { %1774 = vmatpush.msrb.mxu2 %v989_v40  ;;  %v955_v17 = vpop.f32.mrf.mxu0 }
 0x195   : > { %1079 = vmatmul.f32.gmra.mxu3 %v3375_v50  ;;  %v3424_v62 = vpop.f32.mrf.mxu3  ;;  %v956_v18 = vadd.f32 %v3196_v59, %v955_v17 }
 0x196   : > { %v3497_v30 = vadd.f32 %v3269_v52, %v3424_v62 }
 0x197   : > { %1159 = vmatpush.xpose.msrb.mxu0 %v883_v43 }
 0x19b   : > { %1160 = vmatpush.xpose.msrb.mxu0 %v880_v36 }
 0x19c   : > { %v958_v25 = vpop.f32.mrf.mxu0 }
 0x19d   : > { %1082 = vmatmul.f32.gmra.mxu3 %v3386_v21  ;;  %v959_v29 = vadd.f32 %v3196_v59, %v958_v25  ;;  %v686_v37 = vpop.f32.mrf.mxu3 }
 0x19e   : > { %v3503_v44 = vadd.f32 %v3269_v52, %v686_v37 }
 0x19f   : > { %1161 = vmatpush.xpose.msrb.mxu0 %v877_v49 }
 0x1a3   : > { %1162 = vmatpush.xpose.msrb.mxu0 %v874_v9 }
 0x1a5   : > { %1085 = vmatmul.f32.gmra.mxu3 %v3397_v5 }
 0x1a7   : > { %1163 = vmatpush.xpose.msrb.mxu0 %v871_v0 }
 0x1ab   : > { %1164 = vmatpush.xpose.msrb.mxu0 %v868_v51 }
 0x1ad   : > { %1088 = vmatmul.f32.gmra.mxu3 %v3408_v46 }
 0x1ae   : > { %1165 = vmatmul.f32.vlgmr.msrb.gmra.mxu0 %v3273_v45  ;;  %v961_v45 = vpop.f32.mrf.mxu0 }
 0x1af   : > { %v962_v14 = vadd.f32 %v3196_v59, %v961_v45 }
 0x1b1   : > { %1654 = vmatpush.msrb.mxu1 %v962_v14 }
 0x1b3   : > { %1655 = vmatpush.msrb.mxu1 %v959_v29 }
 0x1b5   : > { %1091 = vmatmul.f32.gmra.mxu3 %v3416_v61  ;;  %1656 = vmatpush.msrb.mxu1 %v956_v18 }
 0x1b6   : > { %1168 = vmatmul.f32.gmra.mxu0 %v3280_v32  ;;  %v648_v32 = vadd.f32 %v3269_v52, %v3262_v56  ;;  %v944_v56 = vadd.f32 %v3196_v59, %v3367_v28 }
 0x1b7   : > { %1657 = vmatpush.msrb.mxu1 %v953_v15 }
 0x1bd   : > { %1094 = vmatmul.f32.gmra.mxu3 %v3422_v33 }
 0x1be   : > { %1171 = vmatmul.f32.gmra.mxu0 %v3287_v53  ;;  %v950_v53 = vadd.f32 %v3196_v59, %v949_v13  ;;  %v660_v59 = vadd.f32 %v3269_v52, %v3301_v63  ;;  %v669_v63 = vadd.f32 %v3269_v52, %v3352_v23 }
 0x1c0   : > { %1658 = vmatpush.msrb.mxu1 %v950_v53 }
 0x1c2   : > { %1659 = vmatpush.msrb.mxu1 %v947_v26 }
 0x1c4   : > { %1660 = vmatpush.msrb.mxu1 %v944_v56 }
 0x1c5   : > { %1097 = vmatmul.f32.gmra.mxu3 %v648_v32 }
 0x1c6   : > { %1174 = vmatmul.f32.gmra.mxu0 %v3294_v58  ;;  %v689_v58 = vpop.f32.mrf.mxu3  ;;  %1661 = vmatpush.msrb.mxu1 %v941_v6 }
 0x1c7   : > { %v3511_v12 = vadd.f32 %v3269_v52, %v689_v58 }
 0x1cd   : > { %1100 = vmatmul.f32.gmra.mxu3 %v651_v11 }
 0x1ce   : > { %1177 = vmatmul.f32.gmra.mxu0 %v3299_v22  ;;  %v692_v38 = vpop.f32.mrf.mxu3 }
 0x1cf   : > { %v3521_v54 = vadd.f32 %v3269_v52, %v692_v38 }
 0x1d5   : > { %1103 = vmatmul.f32.gmra.mxu3 %v654_v19 }
 0x1d6   : > { %1180 = vmatmul.f32.gmra.mxu0 %v3308_v31  ;;  %v695_v48 = vpop.f32.mrf.mxu3 }
 0x1d7   : > { %v3531_v4 = vadd.f32 %v3269_v52, %v695_v48 }
 0x1dd   : > { %1106 = vmatmul.f32.gmra.mxu3 %v657_v1 }
 0x1de   : > { %1183 = vmatmul.f32.gmra.mxu0 %v3322_v20  ;;  %v3455_v22 = vpop.f32.mrf.mxu3  ;;  %v672_v20 = vadd.f32 %v3269_v52, %v3377_v27 }
 0x1e5   : > { %1109 = vmatmul.f32.gmra.mxu3 %v660_v59 }
 0x1e6   : > { %1186 = vmatmul.f32.gmra.mxu0 %v3337_v2  ;;  %v3461_v31 = vpop.f32.mrf.mxu3 }
 0x1ed   : > { %1112 = vmatmul.f32.gmra.mxu3 %v663_v10 }
 0x1ee   : > { %1189 = vmatmul.f32.gmra.mxu0 %v3358_v57  ;;  %v3466_v47 = vpop.f32.mrf.mxu3 }
 0x1f5   : > { %1115 = vmatmul.f32.gmra.mxu3 %v666_v16 }
 0x1f6   : > { %1192 = vmatmul.f32.gmra.mxu0 %v3375_v50  ;;  %v3475_v2 = vpop.f32.mrf.mxu3 }
 0x1fd   : > { %1118 = vmatmul.f32.gmra.mxu3 %v669_v63 }
 0x1fe   : > { %1195 = vmatmul.f32.gmra.mxu0 %v3386_v21  ;;  %v3483_v41 = vpop.f32.mrf.mxu3 }
 0x205   : > { %1121 = vmatmul.f32.gmra.mxu3 %v672_v20 }
 0x206   : > { %1198 = vmatmul.f32.gmra.mxu0 %v3397_v5  ;;  %v3493_v24 = vpop.f32.mrf.mxu3 }
 0x20d   : > { %1124 = vmatmul.f32.gmra.mxu3 %v3473_v8 }
 0x20e   : > { %1201 = vmatmul.f32.gmra.mxu0 %v3408_v46  ;;  %v3500_v23 = vpop.f32.mrf.mxu3 }
 0x215   : > { %1127 = vmatmul.f32.gmra.mxu3 %v3481_v7 }
 0x216   : > { %1204 = vmatmul.f32.gmra.mxu0 %v3416_v61  ;;  %v3513_v34 = vpop.f32.mrf.mxu3 }
 0x21d   : > { %1130 = vmatmul.f32.gmra.mxu3 %v3489_v60 }
 0x21e   : > { %1207 = vmatmul.f32.gmra.mxu0 %v3422_v33  ;;  %v3527_v43 = vpop.f32.mrf.mxu3 }
 0x225   : > { %1133 = vmatmul.f32.gmra.mxu3 %v3497_v30 }
 0x226   : > { %1210 = vmatmul.f32.gmra.mxu0 %v648_v32  ;;  %v3538_v49 = vpop.f32.mrf.mxu3 }
 0x22b   : > { %v3505_v57 = vpop.f32.mrf.mxu0 }
 0x22c   : > { %v1262_v3 = vmax.f32 %v3455_v22, %v3505_v57 }
 0x22d   : > { %1136 = vmatmul.f32.gmra.mxu3 %v3503_v44 }
 0x22e   : > { %1213 = vmatmul.f32.gmra.mxu0 %v651_v11  ;;  %1263 = vmax.xlane.f32.xlu0 %v1262_v3  ;;  %v3544_v52 = vpop.f32.mrf.mxu3 }
 0x233   : > { %v3515_v28 = vpop.f32.mrf.mxu0 }
 0x234   : > { %v1265_v40 = vmax.f32 %v3461_v31, %v3515_v28 }
 0x235   : > { %1139 = vmatmul.f32.gmra.mxu3 %v3511_v12 }
 0x236   : > { %1216 = vmatmul.f32.gmra.mxu0 %v654_v19  ;;  %1266 = vmax.xlane.f32.xlu0 %v1265_v40  ;;  %v3550_v0 = vpop.f32.mrf.mxu3 }
 0x23b   : > { %v3523_v50 = vpop.f32.mrf.mxu0 }
 0x23c   : > { %v1268_v27 = vmax.f32 %v3466_v47, %v3523_v50 }
 0x23d   : > { %1142 = vmatmul.f32.gmra.mxu3 %v3521_v54 }
 0x23e   : > { %1219 = vmatmul.f32.gmra.mxu0 %v657_v1  ;;  %1269 = vmax.xlane.f32.xlu1 %v1268_v27  ;;  %v3560_v17 = vpop.f32.mrf.mxu3 }
 0x243   : > { %v3533_v36 = vpop.f32.mrf.mxu0 }
 0x244   : > { %v1271_v21 = vmax.f32 %v3475_v2, %v3533_v36 }
 0x245   : > { %1145 = vmatmul.f32.gmra.mxu3 %v3531_v4 }
 0x246   : > { %1222 = vmatmul.f32.gmra.mxu0 %v660_v59  ;;  %1272 = vmax.xlane.f32.xlu1 %v1271_v21  ;;  %v3567_v25 = vpop.f32.mrf.mxu3 }
 0x24b   : > { %v3540_v35 = vpop.f32.mrf.mxu0 }
 0x24c   : > { %v1274_v13 = vmax.f32 %v3483_v41, %v3540_v35 }
 0x24e   : > { %1225 = vmatmul.f32.gmra.mxu0 %v663_v10  ;;  %1275 = vmax.xlane.f32.xlu2 %v1274_v13  ;;  %v3574_v45 = vpop.f32.mrf.mxu3 }
 0x253   : > { %v3546_v9 = vpop.f32.mrf.mxu0 }
 0x254   : > { %v1277_v5 = vmax.f32 %v3493_v24, %v3546_v9 }
 0x256   : > { %1228 = vmatmul.f32.gmra.mxu0 %v666_v16  ;;  %1278 = vmax.xlane.f32.xlu2 %v1277_v5  ;;  %v3581_v32 = vpop.f32.mrf.mxu3 }
 0x25b   : > { %v3552_v55 = vpop.f32.mrf.mxu0 }
 0x25c   : > { %v1280_v42 = vmax.f32 %v3500_v23, %v3552_v55 }
 0x25e   : > { %1231 = vmatmul.f32.gmra.mxu0 %v669_v63  ;;  %1281 = vmax.xlane.f32.xlu0 %v1280_v42  ;;  %v3592_v26 = vpop.f32.mrf.mxu3 }
 0x263   : > { %v3556_v51 = vpop.f32.mrf.mxu0 }
 0x264   : > { %v1283_v46 = vmax.f32 %v3513_v34, %v3556_v51 }
 0x266   : > { %1234 = vmatmul.f32.gmra.mxu0 %v672_v20  ;;  %1284 = vmax.xlane.f32.xlu1 %v1283_v46  ;;  %v3600_v6 = vpop.f32.mrf.mxu3 }
 0x26b   : > { %v3562_v39 = vpop.f32.mrf.mxu0 }
 0x26c   : > { %v1286_v61 = vmax.f32 %v3527_v43, %v3562_v39 }
 0x26e   : > { %1237 = vmatmul.f32.gmra.mxu0 %v3473_v8  ;;  %1287 = vmax.xlane.f32.xlu2 %v1286_v61  ;;  %v3607_v38 = vpop.f32.mrf.mxu3 }
 0x273   : > { %v3569_v33 = vpop.f32.mrf.mxu0 }
 0x274   : > { %v1289_v62 = vmax.f32 %v3538_v49, %v3569_v33 }
 0x276   : > { %1240 = vmatmul.f32.gmra.mxu0 %v3481_v7  ;;  %1290 = vmax.xlane.f32.xlu0 %v1289_v62 }
 0x27b   : > { %v3576_v14 = vpop.f32.mrf.mxu0 }
 0x27c   : > { %v1292_v29 = vmax.f32 %v3544_v52, %v3576_v14 }
 0x27e   : > { %1243 = vmatmul.f32.gmra.mxu0 %v3489_v60  ;;  %1293 = vmax.xlane.f32.xlu1 %v1292_v29 }
 0x283   : > { %v3583_v18 = vpop.f32.mrf.mxu0 }
 0x284   : > { %v1295_v37 = vmax.f32 %v3550_v0, %v3583_v18 }
 0x286   : > { %1246 = vmatmul.f32.gmra.mxu0 %v3497_v30  ;;  %1296 = vmax.xlane.f32.xlu2 %v1295_v37 }
 0x28b   : > { %v3588_v15 = vpop.f32.mrf.mxu0 }
 0x28c   : > { %v1298_v53 = vmax.f32 %v3560_v17, %v3588_v15 }
 0x28e   : > { %1249 = vmatmul.f32.gmra.mxu0 %v3503_v44  ;;  %1299 = vmax.xlane.f32.xlu0 %v1298_v53 }
 0x293   : > { %v3595_v11 = vpop.f32.mrf.mxu0 }
 0x294   : > { %v1301_v56 = vmax.f32 %v3567_v25, %v3595_v11 }
 0x296   : > { %1252 = vmatmul.f32.gmra.mxu0 %v3511_v12  ;;  %1302 = vmax.xlane.f32.xlu1 %v1301_v56 }
 0x29b   : > { %v3602_v58 = vpop.f32.mrf.mxu0 }
 0x29c   : > { %v1304_v19 = vmax.f32 %v3574_v45, %v3602_v58 }
 0x29e   : > { %1255 = vmatmul.f32.gmra.mxu0 %v3521_v54  ;;  %1305 = vmax.xlane.f32.xlu2 %v1304_v19 }
 0x2a1   : > { %v1264_v1 = vpop.xlane.xlu0 %1263 }
 0x2a2   : > { %v1358_v59 = vsub.f32 %v3455_v22, %v1264_v1  ;;  %v1359_v48 = vsub.f32 %v3505_v57, %v1264_v1  ;;  %v3618_v22 = vpop.f32.mrf.mxu3 }
 0x2a3   : > { %v3611_v10 = vpop.f32.mrf.mxu0 }
 0x2a4   : > { %v1422_v16 = vmul.f32 1.442695, %v1358_v59  ;;  %v1424_v63 = vmul.f32 1.442695, %v1359_v48  ;;  %v1307_v20 = vmax.f32 %v3581_v32, %v3611_v10 }
 0x2a6   : > { %2366 = vpow2.f32 %v1422_v16  ;;  %1258 = vmatmul.f32.gmra.mxu0 %v3531_v4  ;;  %1308 = vmax.xlane.f32.xlu0 %v1307_v20 }
 0x2a7   : > { %2368 = vpow2.f32 %v1424_v63 }
 0x2a9   : > { %v1267_v8 = vpop.xlane.xlu0 %1266 }
 0x2aa   : > { %v1360_v7 = vsub.f32 %v3461_v31, %v1267_v8  ;;  %v1361_v60 = vsub.f32 %v3515_v28, %v1267_v8  ;;  %v3632_v61 = vpop.f32.mrf.mxu3 }
 0x2ab   : > { %v3620_v30 = vpop.f32.mrf.mxu0 }
 0x2ac   : > { %v2367_v44 = vpop.eup %2366  ;;  %v1426_v57 = vmul.f32 1.442695, %v1360_v7  ;;  %v1428_v3 = vmul.f32 1.442695, %v1361_v60  ;;  %v1310_v12 = vmax.f32 %v3592_v26, %v3620_v30 }
 0x2ad   : > { %v2369_v40 = vpop.eup %2368  ;;  %1662 = vmatmul.f32.vlgmr.msrb.gmra.mxu1 %v2367_v44 }
 0x2ae   : > { %2370 = vpow2.f32 %v1426_v57  ;;  %1775 = vmatmul.f32.vlgmr.msrb.gmra.mxu2 %v2369_v40  ;;  %1311 = vmax.xlane.f32.xlu1 %v1310_v12  ;;  %v3624_v54 = vadd.f32 %v2369_v40, %v2367_v44 }
 0x2af   : > { %2372 = vpow2.f32 %v1428_v3 }
 0x2b1   : > { %v1270_v31 = vpop.xlane.xlu1 %1269 }
 0x2b2   : > { %v1362_v28 = vsub.f32 %v3466_v47, %v1270_v31  ;;  %v1363_v27 = vsub.f32 %v3523_v50, %v1270_v31  ;;  %v3644_v16 = vpop.f32.mrf.mxu3 }
 0x2b3   : > { %v3628_v4 = vpop.f32.mrf.mxu0 }
 0x2b4   : > { %v2371_v21 = vpop.eup %2370  ;;  %v1430_v13 = vmul.f32 1.442695, %v1362_v28  ;;  %v1432_v5 = vmul.f32 1.442695, %v1363_v27  ;;  %v1313_v42 = vmax.f32 %v3600_v6, %v3628_v4 }
 0x2b5   : > { %v2373_v46 = vpop.eup %2372  ;;  %1665 = vmatmul.f32.gmra.mxu1 %v2371_v21 }
 0x2b6   : > { %2374 = vpow2.f32 %v1430_v13  ;;  %1778 = vmatmul.f32.gmra.mxu2 %v2373_v46  ;;  %1314 = vmax.xlane.f32.xlu2 %v1313_v42  ;;  %v3634_v62 = vadd.f32 %v2373_v46, %v2371_v21 }
 0x2b7   : > { %2376 = vpow2.f32 %v1432_v5 }
 0x2b9   : > { %v1273_v47 = vpop.xlane.xlu1 %1272 }
 0x2ba   : > { %v1364_v50 = vsub.f32 %v3475_v2, %v1273_v47  ;;  %v1365_v29 = vsub.f32 %v3533_v36, %v1273_v47  ;;  %v3654_v12 = vpop.f32.mrf.mxu3 }
 0x2bb   : > { %v3638_v37 = vpop.f32.mrf.mxu0 }
 0x2bc   : > { %v2375_v53 = vpop.eup %2374  ;;  %v1434_v56 = vmul.f32 1.442695, %v1364_v50  ;;  %v1436_v19 = vmul.f32 1.442695, %v1365_v29  ;;  %v1316_v1 = vmax.f32 %v3607_v38, %v3638_v37 }
 0x2bd   : > { %v2377_v59 = vpop.eup %2376  ;;  %1668 = vmatmul.f32.gmra.mxu1 %v2375_v53 }
 0x2be   : > { %2378 = vpow2.f32 %v1434_v56  ;;  %1781 = vmatmul.f32.gmra.mxu2 %v2377_v59  ;;  %1317 = vmax.xlane.f32.xlu0 %v1316_v1  ;;  %v3642_v48 = vadd.f32 %v2377_v59, %v2375_v53 }
 0x2bf   : > { %2380 = vpow2.f32 %v1436_v19 }
 0x2c1   : > { %v1276_v2 = vpop.xlane.xlu2 %1275 }
 0x2c2   : > { %v1366_v36 = vsub.f32 %v3483_v41, %v1276_v2  ;;  %v1367_v63 = vsub.f32 %v3540_v35, %v1276_v2  ;;  %v3666_v47 = vpop.f32.mrf.mxu3 }
 0x2c3   : > { %v3648_v20 = vpop.f32.mrf.mxu0 }
 0x2c4   : > { %v2379_v8 = vpop.eup %2378  ;;  %v1438_v7 = vmul.f32 1.442695, %v1366_v36  ;;  %v1440_v60 = vmul.f32 1.442695, %v1367_v63  ;;  %v1319_v44 = vmax.f32 %v3618_v22, %v3648_v20 }
 0x2c5   : > { %v2381_v57 = vpop.eup %2380  ;;  %1671 = vmatmul.f32.gmra.mxu1 %v2379_v8 }
 0x2c6   : > { %2382 = vpow2.f32 %v1438_v7  ;;  %1784 = vmatmul.f32.gmra.mxu2 %v2381_v57  ;;  %1320 = vmax.xlane.f32.xlu1 %v1319_v44  ;;  %v3652_v3 = vadd.f32 %v2381_v57, %v2379_v8 }
 0x2c7   : > { %2384 = vpow2.f32 %v1440_v60 }
 0x2c9   : > { %v1279_v41 = vpop.xlane.xlu2 %1278 }
 0x2ca   : > { %v1368_v35 = vsub.f32 %v3493_v24, %v1279_v41  ;;  %v1369_v40 = vsub.f32 %v3546_v9, %v1279_v41  ;;  %v3680_v57 = vpop.f32.mrf.mxu3 }
 0x2cb   : > { %v3658_v31 = vpop.f32.mrf.mxu0 }
 0x2cc   : > { %v2383_v28 = vpop.eup %2382  ;;  %v1442_v27 = vmul.f32 1.442695, %v1368_v35  ;;  %v1444_v21 = vmul.f32 1.442695, %v1369_v40  ;;  %v1322_v13 = vmax.f32 %v3632_v61, %v3658_v31 }
 0x2cd   : > { %v2385_v5 = vpop.eup %2384  ;;  %1674 = vmatmul.f32.gmra.mxu1 %v2383_v28 }
 0x2ce   : > { %2386 = vpow2.f32 %v1442_v27  ;;  %1787 = vmatmul.f32.gmra.mxu2 %v2385_v5  ;;  %1323 = vmax.xlane.f32.xlu2 %v1322_v13  ;;  %v3662_v42 = vadd.f32 %v2385_v5, %v2383_v28 }
 0x2cf   : > { %2388 = vpow2.f32 %v1444_v21 }
 0x2d1   : > { %v1282_v46 = vpop.xlane.xlu0 %1281 }
 0x2d2   : > { %v1370_v24 = vsub.f32 %v3500_v23, %v1282_v46  ;;  %v1371_v9 = vsub.f32 %v3552_v55, %v1282_v46 }
 0x2d3   : > { %v3668_v50 = vpop.f32.mrf.mxu0 }
 0x2d4   : > { %v2387_v29 = vpop.eup %2386  ;;  %v1446_v53 = vmul.f32 1.442695, %v1370_v24  ;;  %v1448_v56 = vmul.f32 1.442695, %v1371_v9  ;;  %v1325_v19 = vmax.f32 %v3644_v16, %v3668_v50  ;;  %v3692_v24 = vpop.f32.mrf.mxu3 }
 0x2d5   : > { %v2389_v1 = vpop.eup %2388  ;;  %1677 = vmatmul.f32.gmra.mxu1 %v2387_v29 }
 0x2d6   : > { %2390 = vpow2.f32 %v1446_v53  ;;  %1790 = vmatmul.f32.gmra.mxu2 %v2389_v1  ;;  %1326 = vmax.xlane.f32.xlu0 %v1325_v19  ;;  %v3672_v59 = vadd.f32 %v2389_v1, %v2387_v29 }
 0x2d7   : > { %2392 = vpow2.f32 %v1448_v56 }
 0x2d9   : > { %v1285_v23 = vpop.xlane.xlu1 %1284 }
 0x2da   : > { %v1372_v55 = vsub.f32 %v3513_v34, %v1285_v23  ;;  %v1373_v2 = vsub.f32 %v3556_v51, %v1285_v23 }
 0x2db   : > { %v3676_v36 = vpop.f32.mrf.mxu0 }
 0x2dc   : > { %v2391_v63 = vpop.eup %2390  ;;  %v1450_v8 = vmul.f32 1.442695, %v1372_v55  ;;  %v1452_v7 = vmul.f32 1.442695, %v1373_v2  ;;  %v1328_v60 = vmax.f32 %v3654_v12, %v3676_v36  ;;  %v3702_v2 = vpop.f32.mrf.mxu3 }
 0x2dd   : > { %v2393_v44 = vpop.eup %2392  ;;  %1680 = vmatmul.f32.gmra.mxu1 %v2391_v63 }
 0x2de   : > { %2394 = vpow2.f32 %v1450_v8  ;;  %1793 = vmatmul.f32.gmra.mxu2 %v2393_v44  ;;  %1329 = vmax.xlane.f32.xlu1 %v1328_v60  ;;  %v3682_v41 = vadd.f32 %v2393_v44, %v2391_v63 }
 0x2df   : > { %2396 = vpow2.f32 %v1452_v7 }
 0x2e1   : > { %v1288_v34 = vpop.xlane.xlu2 %1287 }
 0x2e2   : > { %v1374_v51 = vsub.f32 %v3527_v43, %v1288_v34  ;;  %v1375_v35 = vsub.f32 %v3562_v39, %v1288_v34 }
 0x2e3   : > { %v3686_v40 = vpop.f32.mrf.mxu0 }
 0x2e4   : > { %v2395_v28 = vpop.eup %2394  ;;  %v1454_v27 = vmul.f32 1.442695, %v1374_v51  ;;  %v1456_v21 = vmul.f32 1.442695, %v1375_v35  ;;  %v1331_v13 = vmax.f32 %v3666_v47, %v3686_v40 }
 0x2e5   : > { %v2397_v5 = vpop.eup %2396  ;;  %1683 = vmatmul.f32.gmra.mxu1 %v2395_v28 }
 0x2e6   : > { %2398 = vpow2.f32 %v1454_v27  ;;  %1796 = vmatmul.f32.gmra.mxu2 %v2397_v5  ;;  %1332 = vmax.xlane.f32.xlu2 %v1331_v13  ;;  %v3690_v46 = vadd.f32 %v2397_v5, %v2395_v28  ;;  %v3714_v27 = vpop.f32.mrf.mxu3 }
 0x2e7   : > { %2400 = vpow2.f32 %v1456_v21 }
 0x2e9   : > { %v1291_v43 = vpop.xlane.xlu0 %1290 }
 0x2ea   : > { %v1376_v39 = vsub.f32 %v3538_v49, %v1291_v43  ;;  %v1377_v9 = vsub.f32 %v3569_v33, %v1291_v43 }
 0x2eb   : > { %v3696_v29 = vpop.f32.mrf.mxu0 }
 0x2ec   : > { %v2399_v53 = vpop.eup %2398  ;;  %v1458_v56 = vmul.f32 1.442695, %v1376_v39  ;;  %v1460_v19 = vmul.f32 1.442695, %v1377_v9  ;;  %v1334_v1 = vmax.f32 %v3680_v57, %v3696_v29 }
 0x2ed   : > { %v2401_v23 = vpop.eup %2400  ;;  %1686 = vmatmul.f32.gmra.mxu1 %v2399_v53 }
 0x2ee   : > { %2402 = vpow2.f32 %v1458_v56  ;;  %1799 = vmatmul.f32.gmra.mxu2 %v2401_v23  ;;  %1335 = vmax.xlane.f32.xlu0 %v1334_v1  ;;  %v3700_v55 = vadd.f32 %v2401_v23, %v2399_v53 }
 0x2ef   : > { %2404 = vpow2.f32 %v1460_v19 }
 0x2f1   : > { %v1294_v49 = vpop.xlane.xlu1 %1293 }
 0x2f2   : > { %v1378_v33 = vsub.f32 %v3544_v52, %v1294_v49  ;;  %v1379_v63 = vsub.f32 %v3576_v14, %v1294_v49 }
 0x2f3   : > { %v3706_v8 = vpop.f32.mrf.mxu0 }
 0x2f4   : > { %v2403_v7 = vpop.eup %2402  ;;  %v1462_v60 = vmul.f32 1.442695, %v1378_v33  ;;  %v1464_v44 = vmul.f32 1.442695, %v1379_v63  ;;  %v1337_v34 = vmax.f32 %v3692_v24, %v3706_v8 }
 0x2f5   : > { %v2405_v51 = vpop.eup %2404  ;;  %1689 = vmatmul.f32.gmra.mxu1 %v2403_v7 }
 0x2f6   : > { %2406 = vpow2.f32 %v1462_v60  ;;  %1802 = vmatmul.f32.gmra.mxu2 %v2405_v51  ;;  %1338 = vmax.xlane.f32.xlu1 %v1337_v34  ;;  %v3710_v35 = vadd.f32 %v2405_v51, %v2403_v7  ;;  %v3728_v7 = vpop.f32.mrf.mxu3 }
 0x2f7   : > { %2408 = vpow2.f32 %v1464_v44 }
 0x2f9   : > { %v1297_v28 = vpop.xlane.xlu2 %1296 }
 0x2fa   : > { %v1380_v52 = vsub.f32 %v3550_v0, %v1297_v28  ;;  %v1381_v14 = vsub.f32 %v3583_v18, %v1297_v28 }
 0x2fb   : > { %v3716_v21 = vpop.f32.mrf.mxu0 }
 0x2fc   : > { %v2407_v13 = vpop.eup %2406  ;;  %v1466_v5 = vmul.f32 1.442695, %v1380_v52  ;;  %v1468_v43 = vmul.f32 1.442695, %v1381_v14  ;;  %v1340_v39 = vmax.f32 %v3702_v2, %v3716_v21 }
 0x2fd   : > { %v2409_v9 = vpop.eup %2408  ;;  %1692 = vmatmul.f32.gmra.mxu1 %v2407_v13 }
 0x2fe   : > { %2410 = vpow2.f32 %v1466_v5  ;;  %1805 = vmatmul.f32.gmra.mxu2 %v2409_v9  ;;  %1341 = vmax.xlane.f32.xlu2 %v1340_v39  ;;  %v3720_v53 = vadd.f32 %v2409_v9, %v2407_v13 }
 0x2ff   : > { %2412 = vpow2.f32 %v1468_v43 }
 0x301   : > { %v1300_v0 = vpop.xlane.xlu0 %1299 }
 0x302   : > { %v1382_v18 = vsub.f32 %v3560_v17, %v1300_v0  ;;  %v1383_v56 = vsub.f32 %v3588_v15, %v1300_v0 }
 0x303   : > { %v3724_v19 = vpop.f32.mrf.mxu0 }
 0x304   : > { %v2411_v1 = vpop.eup %2410  ;;  %v1470_v23 = vmul.f32 1.442695, %v1382_v18  ;;  %v1472_v49 = vmul.f32 1.442695, %v1383_v56  ;;  %v1343_v33 = vmax.f32 %v3714_v27, %v3724_v19 }
 0x305   : > { %v2413_v63 = vpop.eup %2412  ;;  %1695 = vmatmul.f32.gmra.mxu1 %v2411_v1 }
 0x306   : > { %2414 = vpow2.f32 %v1470_v23  ;;  %1808 = vmatmul.f32.gmra.mxu2 %v2413_v63  ;;  %1344 = vmax.xlane.f32.xlu0 %v1343_v33  ;;  %v3730_v60 = vadd.f32 %v2413_v63, %v2411_v1 }
 0x307   : > { %2416 = vpow2.f32 %v1472_v49 }
 0x309   : > { %v1303_v17 = vpop.xlane.xlu1 %1302 }
 0x30a   : > { %v1384_v15 = vsub.f32 %v3567_v25, %v1303_v17  ;;  %v1385_v44 = vsub.f32 %v3595_v11, %v1303_v17  ;;  %v3744_v25 = vpop.f32.mrf.mxu3 }
 0x30b   : > { %v3734_v34 = vpop.f32.mrf.mxu0 }
 0x30c   : > { %v3736_v51 = vpop.eup %2414  ;;  %v1474_v28 = vmul.f32 1.442695, %v1384_v15  ;;  %v1476_v52 = vmul.f32 1.442695, %v1385_v44  ;;  %v1346_v14 = vmax.f32 %v3728_v7, %v3734_v34 }
 0x30d   : > { %v3740_v13 = vpop.eup %2416  ;;  %1698 = vmatmul.f32.gmra.mxu1 %v3736_v51 }
 0x30e   : > { %2418 = vpow2.f32 %v1474_v28  ;;  %1811 = vmatmul.f32.gmra.mxu2 %v3740_v13  ;;  %1347 = vmax.xlane.f32.xlu1 %v1346_v14 }
 0x30f   : > { %2420 = vpow2.f32 %v1476_v52 }
 0x311   : > { %v1306_v11 = vpop.xlane.xlu2 %1305 }
 0x312   : > { %v1386_v5 = vsub.f32 %v3574_v45, %v1306_v11  ;;  %v1387_v43 = vsub.f32 %v3602_v58, %v1306_v11  ;;  %v3758_v45 = vpop.f32.mrf.mxu3 }
 0x313   : > { %v3748_v39 = vpop.f32.mrf.mxu0 }
 0x314   : > { %v3750_v9 = vpop.eup %2418  ;;  %v1478_v0 = vmul.f32 1.442695, %v1386_v5  ;;  %v1480_v18 = vmul.f32 1.442695, %v1387_v43  ;;  %v1349_v56 = vmax.f32 %v3744_v25, %v3748_v39 }
 0x315   : > { %v3754_v1 = vpop.eup %2420  ;;  %1701 = vmatmul.f32.gmra.mxu1 %v3750_v9 }
 0x316   : > { %2422 = vpow2.f32 %v1478_v0  ;;  %1814 = vmatmul.f32.gmra.mxu2 %v3754_v1  ;;  %1350 = vmax.xlane.f32.xlu2 %v1349_v56 }
 0x317   : > { %2424 = vpow2.f32 %v1480_v18 }
 0x319   : > { %v1309_v58 = vpop.xlane.xlu0 %1308 }
 0x31a   : > { %v1388_v23 = vsub.f32 %v3581_v32, %v1309_v58  ;;  %v1389_v49 = vsub.f32 %v3611_v10, %v1309_v58  ;;  %v3775_v14 = vpop.f32.mrf.mxu3 }
 0x31b   : > { %v3762_v33 = vpop.f32.mrf.mxu0 }
 0x31c   : > { %v3764_v63 = vpop.eup %2422  ;;  %v1482_v17 = vmul.f32 1.442695, %v1388_v23  ;;  %v1484_v15 = vmul.f32 1.442695, %v1389_v49  ;;  %v1352_v44 = vmax.f32 %v3758_v45, %v3762_v33 }
 0x31d   : > { %v3768_v28 = vpop.eup %2424  ;;  %1704 = vmatmul.f32.gmra.mxu1 %v3764_v63 }
 0x31e   : > { %2426 = vpow2.f32 %v1482_v17  ;;  %1817 = vmatmul.f32.gmra.mxu2 %v3768_v28  ;;  %1551 = vadd.xlane.f32.xlu2 %v3624_v54 }
 0x31f   : > { %2428 = vpow2.f32 %v1484_v15  ;;  %1353 = vmax.xlane.f32.xlu0 %v1352_v44 }
 0x321   : > { %v1312_v32 = vpop.xlane.xlu1 %1311 }
 0x322   : > { %v1390_v10 = vsub.f32 %v3592_v26, %v1312_v32  ;;  %v1391_v52 = vsub.f32 %v3620_v30, %v1312_v32 }
 0x323   : > { %v3777_v11 = vpop.f32.mrf.mxu0 }
 0x324   : > { %v3779_v5 = vpop.eup %2426  ;;  %v1486_v43 = vmul.f32 1.442695, %v1390_v10  ;;  %v1488_v0 = vmul.f32 1.442695, %v1391_v52  ;;  %v1355_v18 = vmax.f32 %v3775_v14, %v3777_v11 }
 0x325   : > { %v3783_v56 = vpop.eup %2428  ;;  %1707 = vmatmul.f32.gmra.mxu1 %v3779_v5 }
 0x326   : > { %2430 = vpow2.f32 %v1486_v43  ;;  %1820 = vmatmul.f32.gmra.mxu2 %v3783_v56  ;;  %1560 = vadd.xlane.f32.xlu2 %v3652_v3 }
 0x327   : > { %2432 = vpow2.f32 %v1488_v0  ;;  %1554 = vadd.xlane.f32.xlu0 %v3634_v62  ;;  %1356 = vmax.xlane.f32.xlu1 %v1355_v18 }
 0x329   : > { %v1315_v26 = vpop.xlane.xlu2 %1314 }
 0x32a   : > { %v1392_v30 = vsub.f32 %v3600_v6, %v1315_v26  ;;  %v1393_v54 = vsub.f32 %v3628_v4, %v1315_v26  ;;  %v1663_v58 = vpop.f32.mrf.mxu1 }
 0x32c   : > { %v3791_v23 = vpop.eup %2430  ;;  %v1490_v49 = vmul.f32 1.442695, %v1392_v30  ;;  %v1492_v17 = vmul.f32 1.442695, %v1393_v54 }
 0x32d   : > { %v3793_v15 = vpop.eup %2432  ;;  %1710 = vmatmul.f32.gmra.mxu1 %v3791_v23 }
 0x32e   : > { %2434 = vpow2.f32 %v1490_v49  ;;  %1823 = vmatmul.f32.gmra.mxu2 %v3793_v15  ;;  %1569 = vadd.xlane.f32.xlu2 %v3682_v41 }
 0x32f   : > { %2436 = vpow2.f32 %v1492_v17  ;;  %1563 = vadd.xlane.f32.xlu0 %v3662_v42  ;;  %1557 = vadd.xlane.f32.xlu1 %v3642_v48 }
 0x331   : > { %v1776_v6 = vpop.f32.mrf.mxu2  ;;  %v1318_v4 = vpop.xlane.xlu0 %1317 }
 0x332   : > { %v3800_v62 = vadd.f32 %v1776_v6, %v1663_v58  ;;  %v1394_v3 = vsub.f32 %v3607_v38, %v1318_v4  ;;  %v1395_v44 = vsub.f32 %v3638_v37, %v1318_v4  ;;  %v1666_v32 = vpop.f32.mrf.mxu1  ;;  %v1595_v4 = vadd.f32 %v3783_v56, %v3779_v5 }
 0x334   : > { %v3804_v10 = vpop.eup %2434  ;;  %v1494_v52 = vmul.f32 1.442695, %v1394_v3  ;;  %v1496_v43 = vmul.f32 1.442695, %v1395_v44 }
 0x335   : > { %v3806_v0 = vpop.eup %2436  ;;  %1713 = vmatmul.f32.gmra.mxu1 %v3804_v10 }
 0x336   : > { %2438 = vpow2.f32 %v1494_v52  ;;  %1826 = vmatmul.f32.gmra.mxu2 %v3806_v0  ;;  %1578 = vadd.xlane.f32.xlu2 %v3710_v35  ;;  %v1586_v35 = vadd.f32 %v3740_v13, %v3736_v51 }
 0x337   : > { %2440 = vpow2.f32 %v1496_v43  ;;  %1572 = vadd.xlane.f32.xlu0 %v3690_v46  ;;  %1566 = vadd.xlane.f32.xlu1 %v3672_v59 }
 0x339   : > { %v1779_v38 = vpop.f32.mrf.mxu2  ;;  %v1321_v37 = vpop.xlane.xlu1 %1320 }
 0x33a   : > { %v3813_v48 = vadd.f32 %v1779_v38, %v1666_v32  ;;  %v1396_v42 = vsub.f32 %v3618_v22, %v1321_v37  ;;  %v1397_v41 = vsub.f32 %v3648_v20, %v1321_v37  ;;  %v1669_v18 = vpop.f32.mrf.mxu1  ;;  %v1598_v38 = vadd.f32 %v3793_v15, %v3791_v23 }
 0x33c   : > { %v2439_v26 = vpop.eup %2438  ;;  %v1498_v30 = vmul.f32 1.442695, %v1396_v42  ;;  %v1500_v54 = vmul.f32 1.442695, %v1397_v41 }
 0x33d   : > { %v2441_v58 = vpop.eup %2440  ;;  %1716 = vmatmul.f32.gmra.mxu1 %v2439_v26 }
 0x33e   : > { %2442 = vpow2.f32 %v1498_v30  ;;  %1829 = vmatmul.f32.gmra.mxu2 %v2441_v58  ;;  %1587 = vadd.xlane.f32.xlu2 %v1586_v35 }
 0x33f   : > { %2444 = vpow2.f32 %v1500_v54  ;;  %1581 = vadd.xlane.f32.xlu0 %v3720_v53  ;;  %1575 = vadd.xlane.f32.xlu1 %v3700_v55  ;;  %v1589_v55 = vadd.f32 %v3754_v1, %v3750_v9  ;;  %v1604_v9 = vadd.f32 %v2441_v58, %v2439_v26 }
 0x341   : > { %v1782_v22 = vpop.f32.mrf.mxu2  ;;  %v1324_v59 = vpop.xlane.xlu2 %1323 }
 0x342   : > { %v3821_v20 = vadd.f32 %v1782_v22, %v1669_v18  ;;  %v1398_v46 = vsub.f32 %v3632_v61, %v1324_v59  ;;  %v1399_v49 = vsub.f32 %v3658_v31, %v1324_v59  ;;  %v1672_v17 = vpop.f32.mrf.mxu1 }
 0x344   : > { %v2443_v51 = vpop.eup %2442  ;;  %v1502_v13 = vmul.f32 1.442695, %v1398_v46  ;;  %v1504_v6 = vmul.f32 1.442695, %v1399_v49 }
 0x345   : > { %v2445_v3 = vpop.eup %2444  ;;  %1719 = vmatmul.f32.gmra.mxu1 %v2443_v51 }
 0x346   : > { %2446 = vpow2.f32 %v1502_v13  ;;  %1832 = vmatmul.f32.gmra.mxu2 %v2445_v3  ;;  %1596 = vadd.xlane.f32.xlu2 %v1595_v4 }
 0x347   : > { %2448 = vpow2.f32 %v1504_v6  ;;  %1590 = vadd.xlane.f32.xlu0 %v1589_v55  ;;  %1584 = vadd.xlane.f32.xlu1 %v3730_v60  ;;  %v1592_v60 = vadd.f32 %v3768_v28, %v3764_v63  ;;  %v1607_v63 = vadd.f32 %v2445_v3, %v2443_v51  ;;  %v1601_v28 = vadd.f32 %v3806_v0, %v3804_v10 }
 0x349   : > { %v1785_v61 = vpop.f32.mrf.mxu2  ;;  %v1327_v31 = vpop.xlane.xlu0 %1326 }
 0x34a   : > { %v3830_v53 = vadd.f32 %v1785_v61, %v1672_v17  ;;  %v1400_v44 = vsub.f32 %v3644_v16, %v1327_v31  ;;  %v1401_v5 = vsub.f32 %v3668_v50, %v1327_v31  ;;  %v1675_v56 = vpop.f32.mrf.mxu1 }
 0x34c   : > { %v2447_v32 = vpop.eup %2446  ;;  %v1506_v52 = vmul.f32 1.442695, %v1400_v44  ;;  %v1508_v43 = vmul.f32 1.442695, %v1401_v5 }
 0x34d   : > { %v2449_v1 = vpop.eup %2448  ;;  %1722 = vmatmul.f32.gmra.mxu1 %v2447_v32 }
 0x34e   : > { %2450 = vpow2.f32 %v1506_v52  ;;  %1835 = vmatmul.f32.gmra.mxu2 %v2449_v1  ;;  %1605 = vadd.xlane.f32.xlu2 %v1604_v9  ;;  %v1610_v0 = vadd.f32 %v2449_v1, %v2447_v32 }
 0x34f   : > { %2452 = vpow2.f32 %v1508_v43  ;;  %1599 = vadd.xlane.f32.xlu0 %v1598_v38  ;;  %1593 = vadd.xlane.f32.xlu1 %v1592_v60 }
 0x351   : > { %v1788_v16 = vpop.f32.mrf.mxu2  ;;  %v1330_v50 = vpop.xlane.xlu1 %1329 }
 0x352   : > { %v3838_v37 = vadd.f32 %v1788_v16, %v1675_v56  ;;  %v1402_v42 = vsub.f32 %v3654_v12, %v1330_v50  ;;  %v1403_v41 = vsub.f32 %v3676_v36, %v1330_v50  ;;  %v1678_v18 = vpop.f32.mrf.mxu1 }
 0x354   : > { %v2451_v26 = vpop.eup %2450  ;;  %v1510_v23 = vmul.f32 1.442695, %v1402_v42  ;;  %v1512_v15 = vmul.f32 1.442695, %v1403_v41 }
 0x355   : > { %v2453_v30 = vpop.eup %2452  ;;  %1725 = vmatmul.f32.gmra.mxu1 %v2451_v26 }
 0x356   : > { %2454 = vpow2.f32 %v1510_v23  ;;  %1838 = vmatmul.f32.gmra.mxu2 %v2453_v30  ;;  %v1613_v54 = vadd.f32 %v2453_v30, %v2451_v26 }
 0x357   : > { %2456 = vpow2.f32 %v1512_v15  ;;  %1608 = vadd.xlane.f32.xlu0 %v1607_v63  ;;  %1602 = vadd.xlane.f32.xlu1 %v1601_v28 }
 0x358   : > { %1614 = vadd.xlane.f32.xlu2 %v1613_v54 }
 0x359   : > { %v1791_v12 = vpop.f32.mrf.mxu2  ;;  %v1333_v35 = vpop.xlane.xlu2 %1332 }
 0x35a   : > { %v3844_v36 = vadd.f32 %v1791_v12, %v1678_v18  ;;  %v1404_v58 = vsub.f32 %v3666_v47, %v1333_v35  ;;  %v1405_v22 = vsub.f32 %v3686_v40, %v1333_v35  ;;  %v1681_v59 = vpop.f32.mrf.mxu1 }
 0x35c   : > { %v2455_v46 = vpop.eup %2454  ;;  %v1514_v49 = vmul.f32 1.442695, %v1404_v58  ;;  %v1516_v17 = vmul.f32 1.442695, %v1405_v22 }
 0x35d   : > { %v2457_v10 = vpop.eup %2456  ;;  %1728 = vmatmul.f32.gmra.mxu1 %v2455_v46 }
 0x35e   : > { %2458 = vpow2.f32 %v1514_v49  ;;  %1841 = vmatmul.f32.gmra.mxu2 %v2457_v10  ;;  %v1616_v51 = vadd.f32 %v2457_v10, %v2455_v46 }
 0x35f   : > { %2460 = vpow2.f32 %v1516_v17  ;;  %1611 = vadd.xlane.f32.xlu1 %v1610_v0 }
 0x360   : > { %1617 = vadd.xlane.f32.xlu0 %v1616_v51 }
 0x361   : > { %v1794_v13 = vpop.f32.mrf.mxu2  ;;  %v1336_v6 = vpop.xlane.xlu0 %1335 }
 0x362   : > { %v3848_v4 = vadd.f32 %v1794_v13, %v1681_v59  ;;  %v1406_v47 = vsub.f32 %v3680_v57, %v1336_v6  ;;  %v1407_v40 = vsub.f32 %v3696_v29, %v1336_v6  ;;  %v1684_v3 = vpop.f32.mrf.mxu1 }
 0x364   : > { %v2459_v55 = vpop.eup %2458  ;;  %v1518_v61 = vmul.f32 1.442695, %v1406_v47  ;;  %v1520_v31 = vmul.f32 1.442695, %v1407_v40 }
 0x365   : > { %v2461_v44 = vpop.eup %2460  ;;  %1731 = vmatmul.f32.gmra.mxu1 %v2459_v55 }
 0x366   : > { %2462 = vpow2.f32 %v1518_v61  ;;  %1844 = vmatmul.f32.gmra.mxu2 %v2461_v44  ;;  %v1619_v5 = vadd.f32 %v2461_v44, %v2459_v55 }
 0x367   : > { %2464 = vpow2.f32 %v1520_v31 }
 0x368   : > { %1620 = vadd.xlane.f32.xlu1 %v1619_v5 }
 0x369   : > { %v1797_v56 = vpop.f32.mrf.mxu2  ;;  %v1339_v32 = vpop.xlane.xlu1 %1338 }
 0x36a   : > { %v3852_v52 = vadd.f32 %v1797_v56, %v1684_v3  ;;  %v1408_v43 = vsub.f32 %v3692_v24, %v1339_v32  ;;  %v1409_v57 = vsub.f32 %v3706_v8, %v1339_v32  ;;  %v1687_v29 = vpop.f32.mrf.mxu1 }
 0x36c   : > { %v2463_v9 = vpop.eup %2462  ;;  %v1522_v1 = vmul.f32 1.442695, %v1408_v43  ;;  %v1524_v38 = vmul.f32 1.442695, %v1409_v57 }
 0x36d   : > { %v2465_v60 = vpop.eup %2464  ;;  %1734 = vmatmul.f32.gmra.mxu1 %v2463_v9 }
 0x36e   : > { %2466 = vpow2.f32 %v1522_v1  ;;  %1847 = vmatmul.f32.gmra.mxu2 %v2465_v60  ;;  %v1622_v16 = vadd.f32 %v2465_v60, %v2463_v9 }
 0x36f   : > { %2468 = vpow2.f32 %v1524_v38 }
 0x370   : > { %1623 = vadd.xlane.f32.xlu2 %v1622_v16 }
 0x371   : > { %v1800_v50 = vpop.f32.mrf.mxu2  ;;  %v1342_v42 = vpop.xlane.xlu2 %1341 }
 0x372   : > { %v3856_v41 = vadd.f32 %v1800_v50, %v1687_v29  ;;  %v1410_v18 = vsub.f32 %v3702_v2, %v1342_v42  ;;  %v1411_v24 = vsub.f32 %v3716_v21, %v1342_v42  ;;  %v3860_v8 = vpop.f32.mrf.mxu1  ;;  %v3886_v42 = vstv %s1936_s24 }
 0x374   : > { %v2467_v26 = vpop.eup %2466  ;;  %v1526_v23 = vmul.f32 1.442695, %v1410_v18  ;;  %v1528_v15 = vmul.f32 1.442695, %v1411_v24 }
 0x375   : > { %v2469_v30 = vpop.eup %2468  ;;  %1737 = vmatmul.f32.gmra.mxu1 %v2467_v26 }
 0x376   : > { %2470 = vpow2.f32 %v1526_v23  ;;  %1850 = vmatmul.f32.gmra.mxu2 %v2469_v30  ;;  %v1625_v63 = vadd.f32 %v2469_v30, %v2467_v26 }
 0x377   : > { %2472 = vpow2.f32 %v1528_v15 }
 0x378   : > { %1626 = vadd.xlane.f32.xlu0 %v1625_v63 }
 0x379   : > { %v3862_v28 = vpop.f32.mrf.mxu2  ;;  %v1345_v54 = vpop.xlane.xlu0 %1344 }
 0x37a   : > { %v1412_v12 = vsub.f32 %v3714_v27, %v1345_v54  ;;  %v1413_v2 = vsub.f32 %v3724_v19, %v1345_v54  ;;  %v3866_v21 = vpop.f32.mrf.mxu1 }
 0x37c   : > { %v2471_v35 = vpop.eup %2470  ;;  %v1530_v58 = vmul.f32 1.442695, %v1412_v12  ;;  %v1532_v22 = vmul.f32 1.442695, %v1413_v2  ;;  %v2558_v12 = vld [vmem:[%s2892_s17] sm:$0xff] }
 0x37d   : > { %v2473_v59 = vpop.eup %2472  ;;  %1740 = vmatmul.f32.gmra.mxu1 %v2471_v35 }
 0x37e   : > { %2474 = vpow2.f32 %v1530_v58  ;;  %1853 = vmatmul.f32.gmra.mxu2 %v2473_v59  ;;  %v1628_v46 = vadd.f32 %v2473_v59, %v2471_v35 }
 0x37f   : > { %2476 = vpow2.f32 %v1532_v22 }
 0x380   : > { %1629 = vadd.xlane.f32.xlu1 %v1628_v46 }
 0x381   : > { %v3868_v49 = vpop.f32.mrf.mxu2  ;;  %v1348_v17 = vpop.xlane.xlu1 %1347 }
 0x382   : > { %v1414_v10 = vsub.f32 %v3728_v7, %v1348_v17  ;;  %v1415_v27 = vsub.f32 %v3734_v34, %v1348_v17  ;;  %v3872_v19 = vpop.f32.mrf.mxu1 }
 0x384   : > { %v2475_v0 = vpop.eup %2474  ;;  %v1534_v51 = vmul.f32 1.442695, %v1414_v10  ;;  %v1536_v13 = vmul.f32 1.442695, %v1415_v27 }
 0x385   : > { %v2477_v6 = vpop.eup %2476  ;;  %1743 = vmatmul.f32.gmra.mxu1 %v2475_v0 }
 0x386   : > { %2478 = vpow2.f32 %v1534_v51  ;;  %1856 = vmatmul.f32.gmra.mxu2 %v2477_v6  ;;  %v1631_v47 = vadd.f32 %v2477_v6, %v2475_v0 }
 0x387   : > { %2480 = vpow2.f32 %v1536_v13 }
 0x388   : > { %1632 = vadd.xlane.f32.xlu2 %v1631_v47  ;;  %v2559_v47 = vld [vmem:[%s2892_s17 + $0x18] sm:$0xff] }
 0x389   : > { %v3874_v40 = vpop.f32.mrf.mxu2  ;;  %v1351_v3 = vpop.xlane.xlu2 %1350 }
 0x38a   : > { %v1416_v55 = vsub.f32 %v3744_v25, %v1351_v3  ;;  %v1417_v7 = vsub.f32 %v3748_v39, %v1351_v3  ;;  %v3878_v34 = vpop.f32.mrf.mxu1 }
 0x38c   : > { %v2479_v61 = vpop.eup %2478  ;;  %v1538_v31 = vmul.f32 1.442695, %v1416_v55  ;;  %v1540_v44 = vmul.f32 1.442695, %v1417_v7  ;;  %v2560_v7 = vld [vmem:[%s2892_s17 + $0x8] sm:$0xff] }
 0x38d   : > { %v2481_v5 = vpop.eup %2480  ;;  %1746 = vmatmul.f32.gmra.mxu1 %v2479_v61 }
 0x38e   : > { %2482 = vpow2.f32 %v1538_v31  ;;  %1859 = vmatmul.f32.gmra.mxu2 %v2481_v5  ;;  %v1634_v56 = vadd.f32 %v2481_v5, %v2479_v61 }
 0x38f   : > { %2484 = vpow2.f32 %v1540_v44 }
 0x390   : > { %1635 = vadd.xlane.f32.xlu0 %v1634_v56 }
 0x391   : > { %v3880_v32 = vpop.f32.mrf.mxu2  ;;  %v1552_v43 = vpop.xlane.xlu2 %1551 }
 0x392   : > { %2486 = vrcp.f32 %v1552_v43  ;;  %v1354_v25 = vpop.xlane.xlu0 %1353  ;;  %v3882_v57 = vpop.f32.mrf.mxu1 }
 0x393   : > { %v1418_v39 = vsub.f32 %v3758_v45, %v1354_v25  ;;  %v1419_v29 = vsub.f32 %v3762_v33, %v1354_v25 }
 0x394   : > { %v2483_v9 = vpop.eup %2482 }
 0x395   : > { %v2485_v1 = vpop.eup %2484  ;;  %v1542_v38 = vmul.f32 1.442695, %v1418_v39  ;;  %v1544_v60 = vmul.f32 1.442695, %v1419_v29  ;;  %1749 = vmatmul.f32.gmra.mxu1 %v2483_v9 }
 0x396   : > { %1862 = vmatmul.f32.gmra.mxu2 %v2485_v1  ;;  %v1637_v16 = vadd.f32 %v2485_v1, %v2483_v9 }
 0x397   : > { %2488 = vpow2.f32 %v1542_v38 }
 0x398   : > { %v2487_v50 = vpop.eup %2486  ;;  %2490 = vpow2.f32 %v1544_v60  ;;  %1638 = vadd.xlane.f32.xlu1 %v1637_v16  ;;  %v2561_v16 = vld [vmem:[%s2892_s17 + $0x30] sm:$0xff] }
 0x399   : > { %v1904_v18 = vmul.f32 %v2487_v50, %v3800_v62  ;;  %v3889_v24 = vpop.f32.mrf.mxu2  ;;  %v1561_v45 = vpop.xlane.xlu2 %1560 }
 0x39a   : > { %2492 = vrcp.f32 %v1561_v45  ;;  %v1555_v33 = vpop.xlane.xlu0 %1554  ;;  %v1357_v26 = vpop.xlane.xlu1 %1356 }
 0x39b   : > { %v1938_v23 = vmul.f32 %v3886_v42, %v1904_v18  ;;  %2494 = vrcp.f32 %v1555_v33  ;;  %v1420_v15 = vsub.f32 %v3775_v14, %v1357_v26  ;;  %v1421_v30 = vsub.f32 %v3777_v11, %v1357_v26  ;;  %v3894_v63 = vpop.f32.mrf.mxu1  ;;  %v2562_v18 = vld [vmem:[%s2892_s17 + $0x20] sm:$0xff]  ;;  %v2563_v26 = vld [vmem:[%s2892_s17 + $0x10] sm:$0xff] }
 0x39c   : > { %v1804_v33 = vadd.f32 %v3862_v28, %v3860_v8 }
 0x39d   : > { %v2489_v54 = vpop.eup %2488  ;;  %v1970_v2 = vadd.f32 %v2558_v12, %v1938_v23  ;;  %v1546_v62 = vmul.f32 1.442695, %v1420_v15  ;;  %v1548_v35 = vmul.f32 1.442695, %v1421_v30 }
 0x39e   : > { %v2491_v58 = vpop.eup %2490  ;;  %1752 = vmatmul.f32.gmra.mxu1 %v2489_v54 }
 0x39f   : > { %2002 = vst.msk [vmem:[%s3898_s26] sm:$0xff] %vm488_vm0, %v1970_v2  ;;  %2496 = vpow2.f32 %v1546_v62  ;;  %1865 = vmatmul.f32.gmra.mxu2 %v2491_v58  ;;  %v1640_v22 = vadd.f32 %v2491_v58, %v2489_v54 }
 0x3a0   : > { %v2493_v14 = vpop.eup %2492  ;;  %2498 = vpow2.f32 %v1548_v35 }
 0x3a1   : > { %v2495_v11 = vpop.eup %2494  ;;  %v1907_v59 = vmul.f32 %v2493_v14, %v3830_v53  ;;  %1641 = vadd.xlane.f32.xlu2 %v1640_v22  ;;  %v3903_v46 = vpop.f32.mrf.mxu2 }
 0x3a2   : > { %v1570_v17 = vpop.xlane.xlu2 %1569  ;;  %v1905_v10 = vmul.f32 %v2495_v11, %v3813_v48  ;;  %v1564_v27 = vpop.xlane.xlu0 %1563  ;;  %v2564_v11 = vld [vmem:[%s2892_s17 + $0x48] sm:$0xff] }
 0x3a3   : > { %2500 = vrcp.f32 %v1570_v17  ;;  %v1558_v0 = vpop.xlane.xlu1 %1557  ;;  %v1941_v51 = vmul.f32 %v3886_v42, %v1907_v59  ;;  %v3907_v13 = vpop.f32.mrf.mxu1  ;;  %v2565_v17 = vld [vmem:[%s2892_s17 + $0x38] sm:$0xff] }
 0x3a4   : > { %2502 = vrcp.f32 %v1564_v27  ;;  %v1939_v6 = vmul.f32 %v3886_v42, %v1905_v10  ;;  %v1813_v27 = vadd.f32 %v3880_v32, %v3878_v34 }
 0x3a5   : > { %2504 = vrcp.f32 %v1558_v0  ;;  %v2497_v53 = vpop.eup %2496  ;;  %v1973_v3 = vadd.f32 %v2559_v47, %v1941_v51 }
 0x3a6   : > { %v2499_v55 = vpop.eup %2498  ;;  %v1971_v61 = vadd.f32 %v2560_v7, %v1939_v6  ;;  %1755 = vmatmul.f32.gmra.mxu1 %v2497_v53  ;;  %v1807_v6 = vadd.f32 %v3868_v49, %v3866_v21 }
 0x3a7   : > { %2005 = vst.msk [vmem:[%s3898_s26 + $0x18] sm:$0xff] %vm488_vm0, %v1973_v3  ;;  %1868 = vmatmul.f32.gmra.mxu2 %v2499_v55  ;;  %v1643_v48 = vadd.f32 %v2499_v55, %v2497_v53 }
 0x3a8   : > { %2003 = vst.msk [vmem:[%s3898_s26 + $0x8] sm:$0xff] %vm488_vm0, %v1971_v61 }
 0x3a9   : > { %v2501_v31 = vpop.eup %2500  ;;  %1644 = vadd.xlane.f32.xlu0 %v1643_v48  ;;  %v3917_v56 = vpop.f32.mrf.mxu2 }
 0x3aa   : > { %v2503_v44 = vpop.eup %2502  ;;  %v1910_v5 = vmul.f32 %v2501_v31, %v3848_v4  ;;  %v1579_v43 = vpop.xlane.xlu2 %1578 }
 0x3ab   : > { %v2505_v25 = vpop.eup %2504  ;;  %v1908_v39 = vmul.f32 %v2503_v44, %v3838_v37  ;;  %2506 = vrcp.f32 %v1579_v43  ;;  %v1573_v29 = vpop.xlane.xlu0 %1572  ;;  %v2567_v44 = vld [vmem:[%s2892_s17 + $0x60] sm:$0xff] }
 0x3ac   : > { %v1567_v9 = vpop.xlane.xlu1 %1566  ;;  %v1944_v1 = vmul.f32 %v3886_v42, %v1910_v5  ;;  %v1906_v38 = vmul.f32 %v2505_v25, %v3821_v20  ;;  %2508 = vrcp.f32 %v1573_v29  ;;  %v3922_v4 = vpop.f32.mrf.mxu1  ;;  %v2568_v25 = vld [vmem:[%s2892_s17 + $0x50] sm:$0xff]  ;;  %v1822_v29 = vadd.f32 %v3917_v56, %v3907_v13 }
 0x3ad   : > { %v1942_v60 = vmul.f32 %v3886_v42, %v1908_v39  ;;  %2510 = vrcp.f32 %v1567_v9  ;;  %v2569_v9 = vld [vmem:[%s2892_s17 + $0x40] sm:$0xff] }
 0x3ae   : > { %v1976_v50 = vadd.f32 %v2561_v16, %v1944_v1  ;;  %v1940_v37 = vmul.f32 %v3886_v42, %v1906_v38  ;;  %v1816_v38 = vadd.f32 %v3889_v24, %v3882_v57  ;;  %v1810_v16 = vadd.f32 %v3874_v40, %v3872_v19 }
 0x3af   : > { %v1974_v45 = vadd.f32 %v2562_v18, %v1942_v60 }
 0x3b0   : > { %2008 = vst.msk [vmem:[%s3898_s26 + $0x30] sm:$0xff] %vm488_vm0, %v1976_v50  ;;  %v1972_v20 = vadd.f32 %v2563_v26, %v1940_v37  ;;  %v2570_v26 = vld [vmem:[%s2892_s17 + $0x78] sm:$0xff] }
 0x3b1   : > { %v2507_v23 = vpop.eup %2506  ;;  %2006 = vst.msk [vmem:[%s3898_s26 + $0x20] sm:$0xff] %vm488_vm0, %v1974_v45  ;;  %v3937_v54 = vpop.f32.mrf.mxu2 }
 0x3b2   : > { %v2509_v15 = vpop.eup %2508  ;;  %2004 = vst.msk [vmem:[%s3898_s26 + $0x10] sm:$0xff] %vm488_vm0, %v1972_v20  ;;  %v1913_v30 = vmul.f32 %v2507_v23, %v1804_v33  ;;  %v1588_v12 = vpop.xlane.xlu2 %1587 }
 0x3b3   : > { %v2511_v2 = vpop.eup %2510  ;;  %v1911_v62 = vmul.f32 %v2509_v15, %v3852_v52  ;;  %2512 = vrcp.f32 %v1588_v12  ;;  %v1582_v8 = vpop.xlane.xlu0 %1581  ;;  %v2571_v15 = vld [vmem:[%s2892_s17 + $0x68] sm:$0xff]  ;;  %v2572_v12 = vld [vmem:[%s2892_s17 + $0x58] sm:$0xff] }
 0x3b4   : > { %v1576_v28 = vpop.xlane.xlu1 %1575  ;;  %v1947_v35 = vmul.f32 %v3886_v42, %v1913_v30  ;;  %v1909_v58 = vmul.f32 %v2511_v2, %v3844_v36  ;;  %2514 = vrcp.f32 %v1582_v8  ;;  %v3942_v22 = vpop.f32.mrf.mxu1  ;;  %v2566_v36 = vld [vmem:[%s2892_s17 + $0x28] sm:$0xff] }
 0x3b5   : > { %v1945_v14 = vmul.f32 %v3886_v42, %v1911_v62  ;;  %2516 = vrcp.f32 %v1576_v28  ;;  %v1825_v28 = vadd.f32 %v3937_v54, %v3922_v4 }
 0x3b6   : > { %v1979_v59 = vadd.f32 %v2564_v11, %v1947_v35  ;;  %v1943_v52 = vmul.f32 %v3886_v42, %v1909_v58  ;;  %v1819_v58 = vadd.f32 %v3903_v46, %v3894_v63  ;;  %v2573_v46 = vld [vmem:[%s2892_s17 + $0x90] sm:$0xff] }
 0x3b7   : > { %v1977_v10 = vadd.f32 %v2565_v17, %v1945_v14 }
 0x3b8   : > { %2011 = vst.msk [vmem:[%s3898_s26 + $0x48] sm:$0xff] %vm488_vm0, %v1979_v59  ;;  %v1975_v0 = vadd.f32 %v2566_v36, %v1943_v52 }
 0x3b9   : > { %v2513_v51 = vpop.eup %2512  ;;  %2009 = vst.msk [vmem:[%s3898_s26 + $0x38] sm:$0xff] %vm488_vm0, %v1977_v10  ;;  %v3959_v3 = vpop.f32.mrf.mxu2 }
 0x3ba   : > { %v2515_v53 = vpop.eup %2514  ;;  %2007 = vst.msk [vmem:[%s3898_s26 + $0x28] sm:$0xff] %vm488_vm0, %v1975_v0  ;;  %v1916_v47 = vmul.f32 %v2513_v51, %v1813_v27  ;;  %v1597_v55 = vpop.xlane.xlu2 %1596  ;;  %v2574_v51 = vld [vmem:[%s2892_s17 + $0x80] sm:$0xff] }
 0x3bb   : > { %v2517_v34 = vpop.eup %2516  ;;  %v1914_v32 = vmul.f32 %v2515_v53, %v1807_v6  ;;  %2518 = vrcp.f32 %v1597_v55  ;;  %v1591_v7 = vpop.xlane.xlu0 %1590  ;;  %v2575_v53 = vld [vmem:[%s2892_s17 + $0x70] sm:$0xff] }
 0x3bc   : > { %v1585_v61 = vpop.xlane.xlu1 %1584  ;;  %v1950_v21 = vmul.f32 %v3886_v42, %v1916_v47  ;;  %v1912_v49 = vmul.f32 %v2517_v34, %v3856_v41  ;;  %2520 = vrcp.f32 %v1591_v7  ;;  %v1717_v48 = vpop.f32.mrf.mxu1 }
 0x3bd   : > { %v1948_v31 = vmul.f32 %v3886_v42, %v1914_v32  ;;  %2522 = vrcp.f32 %v1585_v61  ;;  %v1828_v32 = vadd.f32 %v3959_v3, %v3942_v22  ;;  %v2577_v22 = vld [vmem:[%s2892_s17 + $0x88] sm:$0xff] }
 0x3be   : > { %v1982_v5 = vadd.f32 %v2567_v44, %v1950_v21  ;;  %v1946_v43 = vmul.f32 %v3886_v42, %v1912_v49 }
 0x3bf   : > { %v1980_v39 = vadd.f32 %v2568_v25, %v1948_v31  ;;  %v2576_v25 = vld [vmem:[%s2892_s17 + $0x98] sm:$0xff] }
 0x3c0   : > { %2014 = vst.msk [vmem:[%s3898_s26 + $0x60] sm:$0xff] %vm488_vm0, %v1982_v5  ;;  %v1978_v41 = vadd.f32 %v2569_v9, %v1946_v43 }
 0x3c1   : > { %v2519_v1 = vpop.eup %2518  ;;  %2012 = vst.msk [vmem:[%s3898_s26 + $0x50] sm:$0xff] %vm488_vm0, %v1980_v39  ;;  %v1830_v37 = vpop.f32.mrf.mxu2 }
 0x3c2   : > { %v2521_v60 = vpop.eup %2520  ;;  %2010 = vst.msk [vmem:[%s3898_s26 + $0x40] sm:$0xff] %vm488_vm0, %v1978_v41  ;;  %v1919_v50 = vmul.f32 %v2519_v1, %v1822_v29  ;;  %v1606_v13 = vpop.xlane.xlu2 %1605  ;;  %v1831_v62 = vadd.f32 %v1830_v37, %v1717_v48 }
 0x3c3   : > { %v2523_v56 = vpop.eup %2522  ;;  %v1917_v18 = vmul.f32 %v2521_v60, %v1816_v38  ;;  %2524 = vrcp.f32 %v1606_v13  ;;  %v1600_v45 = vpop.xlane.xlu0 %1599 }
 0x3c4   : > { %v1594_v57 = vpop.xlane.xlu1 %1593  ;;  %v1953_v24 = vmul.f32 %v3886_v42, %v1919_v50  ;;  %v1915_v33 = vmul.f32 %v2523_v56, %v1810_v16  ;;  %2526 = vrcp.f32 %v1600_v45  ;;  %v1720_v19 = vpop.f32.mrf.mxu1  ;;  %v2578_v56 = vld [vmem:[%s2892_s17 + $0xa0] sm:$0xff] }
 0x3c5   : > { %v1951_v40 = vmul.f32 %v3886_v42, %v1917_v18  ;;  %2528 = vrcp.f32 %v1594_v57  ;;  %v2579_v57 = vld [vmem:[%s2892_s17 + $0xa8] sm:$0xff] }
 0x3c6   : > { %v1985_v20 = vadd.f32 %v2570_v26, %v1953_v24  ;;  %v1949_v23 = vmul.f32 %v3886_v42, %v1915_v33 }
 0x3c7   : > { %v1983_v30 = vadd.f32 %v2571_v15, %v1951_v40 }
 0x3c8   : > { %2017 = vst.msk [vmem:[%s3898_s26 + $0x78] sm:$0xff] %vm488_vm0, %v1985_v20  ;;  %v1981_v2 = vadd.f32 %v2572_v12, %v1949_v23 }
 0x3c9   : > { %v2525_v8 = vpop.eup %2524  ;;  %2015 = vst.msk [vmem:[%s3898_s26 + $0x68] sm:$0xff] %vm488_vm0, %v1983_v30  ;;  %v1833_v11 = vpop.f32.mrf.mxu2  ;;  %v2580_v30 = vld [vmem:[%s2892_s17 + $0xb0] sm:$0xff] }
 0x3ca   : > { %v2527_v35 = vpop.eup %2526  ;;  %2013 = vst.msk [vmem:[%s3898_s26 + $0x58] sm:$0xff] %vm488_vm0, %v1981_v2  ;;  %v1922_v14 = vmul.f32 %v2525_v8, %v1831_v62  ;;  %v1834_v55 = vadd.f32 %v1833_v11, %v1720_v19  ;;  %v2581_v11 = vld [vmem:[%s2892_s17 + $0xb8] sm:$0xff] }
 0x3cb   : > { %v2529_v59 = vpop.eup %2528  ;;  %v1920_v52 = vmul.f32 %v2527_v35, %v1825_v28  ;;  %v1609_v17 = vpop.xlane.xlu0 %1608 }
 0x3cc   : > { %v1603_v10 = vpop.xlane.xlu1 %1602  ;;  %v1956_v4 = vmul.f32 %v3886_v42, %v1922_v14  ;;  %v1918_v54 = vmul.f32 %v2529_v59, %v1819_v58  ;;  %2530 = vrcp.f32 %v1609_v17  ;;  %v1723_v27 = vpop.f32.mrf.mxu1 }
 0x3cd   : > { %v1954_v63 = vmul.f32 %v3886_v42, %v1920_v52  ;;  %2532 = vrcp.f32 %v1603_v10  ;;  %v1615_v49 = vpop.xlane.xlu2 %1614 }
 0x3ce   : > { %v1988_v36 = vadd.f32 %v2573_v46, %v1956_v4  ;;  %v1952_v0 = vmul.f32 %v3886_v42, %v1918_v54  ;;  %v2582_v46 = vld [vmem:[%s2892_s17 + $0xc0] sm:$0xff] }
 0x3cf   : > { %v1986_v6 = vadd.f32 %v2574_v51, %v1954_v63 }
 0x3d0   : > { %2020 = vst.msk [vmem:[%s3898_s26 + $0x90] sm:$0xff] %vm488_vm0, %v1988_v36  ;;  %v1984_v47 = vadd.f32 %v2575_v53, %v1952_v0 }
 0x3d1   : > { %2018 = vst.msk [vmem:[%s3898_s26 + $0x80] sm:$0xff] %vm488_vm0, %v1986_v6  ;;  %v1836_v7 = vpop.f32.mrf.mxu2 }
 0x3d2   : > { %v2531_v34 = vpop.eup %2530  ;;  %2016 = vst.msk [vmem:[%s3898_s26 + $0x70] sm:$0xff] %vm488_vm0, %v1984_v47  ;;  %v1837_v29 = vadd.f32 %v1836_v7, %v1723_v27 }
 0x3d3   : > { %v2533_v61 = vpop.eup %2532  ;;  %v1923_v21 = vmul.f32 %v2531_v34, %v1834_v55  ;;  %v1618_v38 = vpop.xlane.xlu0 %1617 }
 0x3d4   : > { %v1612_v48 = vpop.xlane.xlu1 %1611  ;;  %v1921_v31 = vmul.f32 %v2533_v61, %v1828_v32  ;;  %v1726_v44 = vpop.f32.mrf.mxu1  ;;  %v2583_v32 = vld [vmem:[%s2892_s17 + $0xc8] sm:$0xff] }
 0x3d5   : > { %2534 = vrcp.f32 %v1612_v48  ;;  %v1957_v5 = vmul.f32 %v3886_v42, %v1923_v21 }
 0x3d6   : > { %v1955_v43 = vmul.f32 %v3886_v42, %v1921_v31  ;;  %2536 = vrcp.f32 %v1615_v49 }
 0x3d7   : > { %v1989_v39 = vadd.f32 %v2576_v25, %v1957_v5  ;;  %2538 = vrcp.f32 %v1618_v38  ;;  %v2585_v38 = vld [vmem:[%s2892_s17 + $0xd8] sm:$0xff] }
 0x3d8   : > { %v1987_v3 = vadd.f32 %v2577_v22, %v1955_v43  ;;  %v2584_v43 = vld [vmem:[%s2892_s17 + $0xd0] sm:$0xff] }
 0x3d9   : > { %2021 = vst.msk [vmem:[%s3898_s26 + $0x98] sm:$0xff] %vm488_vm0, %v1989_v39  ;;  %v1839_v41 = vpop.f32.mrf.mxu2 }
 0x3da   : > { %2019 = vst.msk [vmem:[%s3898_s26 + $0x88] sm:$0xff] %vm488_vm0, %v1987_v3  ;;  %v1840_v60 = vadd.f32 %v1839_v41, %v1726_v44 }
 0x3db   : > { %v2535_v9 = vpop.eup %2534 }
 0x3dc   : > { %v1924_v1 = vmul.f32 %v2535_v9, %v1837_v29  ;;  %v2537_v16 = vpop.eup %2536  ;;  %v1729_v50 = vpop.f32.mrf.mxu1 }
 0x3dd   : > { %v1925_v13 = vmul.f32 %v2537_v16, %v1840_v60  ;;  %v1621_v19 = vpop.xlane.xlu1 %1620  ;;  %v2539_v26 = vpop.eup %2538 }
 0x3de   : > { %v1958_v37 = vmul.f32 %v3886_v42, %v1924_v1  ;;  %2540 = vrcp.f32 %v1621_v19 }
 0x3df   : > { %v1959_v45 = vmul.f32 %v3886_v42, %v1925_v13 }
 0x3e0   : > { %v1990_v18 = vadd.f32 %v2578_v56, %v1958_v37 }
 0x3e1   : > { %v1991_v24 = vadd.f32 %v2579_v57, %v1959_v45  ;;  %v1842_v33 = vpop.f32.mrf.mxu2  ;;  %v2586_v57 = vld [vmem:[%s2892_s17 + $0xe0] sm:$0xff] }
 0x3e2   : > { %2022 = vst.msk [vmem:[%s3898_s26 + $0xa0] sm:$0xff] %vm488_vm0, %v1990_v18  ;;  %v1843_v40 = vadd.f32 %v1842_v33, %v1729_v50 }
 0x3e3   : > { %2023 = vst.msk [vmem:[%s3898_s26 + $0xa8] sm:$0xff] %vm488_vm0, %v1991_v24  ;;  %v1624_v62 = vpop.xlane.xlu2 %1623 }
 0x3e4   : > { %v1732_v20 = vpop.f32.mrf.mxu1  ;;  %v1926_v23 = vmul.f32 %v2539_v26, %v1843_v40  ;;  %v2541_v28 = vpop.eup %2540  ;;  %2542 = vrcp.f32 %v1624_v62 }
 0x3e6   : > { %v1960_v15 = vmul.f32 %v3886_v42, %v1926_v23 }
 0x3e8   : > { %v1992_v12 = vadd.f32 %v2580_v30, %v1960_v15  ;;  %v2587_v15 = vld [vmem:[%s2892_s17 + $0xe8] sm:$0xff] }
 0x3e9   : > { %v1845_v2 = vpop.f32.mrf.mxu2 }
 0x3ea   : > { %2024 = vst.msk [vmem:[%s3898_s26 + $0xb0] sm:$0xff] %vm488_vm0, %v1992_v12  ;;  %v1846_v8 = vadd.f32 %v1845_v2, %v1732_v20  ;;  %v2543_v4 = vpop.eup %2542 }
 0x3eb   : > { %v1627_v17 = vpop.xlane.xlu0 %1626 }
 0x3ec   : > { %v1735_v35 = vpop.f32.mrf.mxu1  ;;  %v1927_v58 = vmul.f32 %v2541_v28, %v1846_v8  ;;  %2544 = vrcp.f32 %v1627_v17 }
 0x3ee   : > { %v1961_v14 = vmul.f32 %v3886_v42, %v1927_v58 }
 0x3f0   : > { %v1993_v59 = vadd.f32 %v2581_v11, %v1961_v14  ;;  %v2588_v14 = vld [vmem:[%s2892_s17 + $0xf0] sm:$0xff] }
 0x3f1   : > { %v1848_v52 = vpop.f32.mrf.mxu2 }
 0x3f2   : > { %2025 = vst.msk [vmem:[%s3898_s26 + $0xb8] sm:$0xff] %vm488_vm0, %v1993_v59  ;;  %v1849_v10 = vadd.f32 %v1848_v52, %v1735_v35  ;;  %v2545_v53 = vpop.eup %2544 }
 0x3f3   : > { %v1630_v51 = vpop.xlane.xlu1 %1629 }
 0x3f4   : > { %v1738_v54 = vpop.f32.mrf.mxu1  ;;  %v1928_v27 = vmul.f32 %v2543_v4, %v1849_v10  ;;  %2546 = vrcp.f32 %v1630_v51 }
 0x3f6   : > { %v1962_v63 = vmul.f32 %v3886_v42, %v1928_v27  ;;  %v2589_v27 = vld [vmem:[%s2892_s17 + $0xf8] sm:$0xff] }
 0x3f8   : > { %v1994_v36 = vadd.f32 %v2582_v46, %v1962_v63 }
 0x3f9   : > { %v1851_v0 = vpop.f32.mrf.mxu2 }
 0x3fa   : > { %2026 = vst.msk [vmem:[%s3898_s26 + $0xc0] sm:$0xff] %vm488_vm0, %v1994_v36  ;;  %v1852_v6 = vadd.f32 %v1851_v0, %v1738_v54  ;;  %v2547_v48 = vpop.eup %2546 }
 0x3fb   : > { %v1633_v21 = vpop.xlane.xlu2 %1632 }
 0x3fc   : > { %v1741_v47 = vpop.f32.mrf.mxu1  ;;  %v1929_v55 = vmul.f32 %v2545_v53, %v1852_v6  ;;  %2548 = vrcp.f32 %v1633_v21 }
 0x3fe   : > { %v1963_v34 = vmul.f32 %v3886_v42, %v1929_v55 }
 0x400   : > { %v1995_v7 = vadd.f32 %v2583_v32, %v1963_v34 }
 0x401   : > { %v1854_v61 = vpop.f32.mrf.mxu2 }
 0x402   : > { %2027 = vst.msk [vmem:[%s3898_s26 + $0xc8] sm:$0xff] %vm488_vm0, %v1995_v7  ;;  %v1855_v49 = vadd.f32 %v1854_v61, %v1741_v47  ;;  %v2549_v29 = vpop.eup %2548 }
 0x403   : > { %v1636_v22 = vpop.xlane.xlu0 %1635 }
 0x404   : > { %v1744_v31 = vpop.f32.mrf.mxu1  ;;  %v1930_v44 = vmul.f32 %v2547_v48, %v1855_v49  ;;  %2550 = vrcp.f32 %v1636_v22 }
 0x406   : > { %v1964_v5 = vmul.f32 %v3886_v42, %v1930_v44 }
 0x408   : > { %v1996_v25 = vadd.f32 %v2584_v43, %v1964_v5 }
 0x409   : > { %v1857_v39 = vpop.f32.mrf.mxu2 }
 0x40a   : > { %2028 = vst.msk [vmem:[%s3898_s26 + $0xd0] sm:$0xff] %vm488_vm0, %v1996_v25  ;;  %v1858_v3 = vadd.f32 %v1857_v39, %v1744_v31  ;;  %v2551_v13 = vpop.eup %2550 }
 0x40b   : > { %v1639_v50 = vpop.xlane.xlu1 %1638 }
 0x40c   : > { %v1931_v9 = vmul.f32 %v2549_v29, %v1858_v3  ;;  %v1747_v41 = vpop.f32.mrf.mxu1  ;;  %2552 = vrcp.f32 %v1639_v50 }
 0x40e   : > { %v1965_v1 = vmul.f32 %v3886_v42, %v1931_v9 }
 0x410   : > { %v1997_v60 = vadd.f32 %v2585_v38, %v1965_v1 }
 0x411   : > { %v1860_v16 = vpop.f32.mrf.mxu2 }
 0x412   : > { %2029 = vst.msk [vmem:[%s3898_s26 + $0xd8] sm:$0xff] %vm488_vm0, %v1997_v60  ;;  %v1861_v37 = vadd.f32 %v1860_v16, %v1747_v41  ;;  %v2553_v40 = vpop.eup %2552 }
 0x414   : > { %v1932_v56 = vmul.f32 %v2551_v13, %v1861_v37  ;;  %v1750_v45 = vpop.f32.mrf.mxu1  ;;  %v1642_v26 = vpop.xlane.xlu2 %1641 }
 0x415   : > { %2554 = vrcp.f32 %v1642_v26 }
 0x416   : > { %v1966_v18 = vmul.f32 %v3886_v42, %v1932_v56 }
 0x418   : > { %v1998_v24 = vadd.f32 %v2586_v57, %v1966_v18 }
 0x419   : > { %v1863_v33 = vpop.f32.mrf.mxu2 }
 0x41a   : > { %2030 = vst.msk [vmem:[%s3898_s26 + $0xe0] sm:$0xff] %vm488_vm0, %v1998_v24  ;;  %v1864_v19 = vadd.f32 %v1863_v33, %v1750_v45 }
 0x41b   : > { %v2555_v28 = vpop.eup %2554 }
 0x41c   : > { %v1933_v20 = vmul.f32 %v2553_v40, %v1864_v19  ;;  %v1753_v12 = vpop.f32.mrf.mxu1  ;;  %v1645_v62 = vpop.xlane.xlu0 %1644 }
 0x41d   : > { %2556 = vrcp.f32 %v1645_v62 }
 0x41e   : > { %v1967_v23 = vmul.f32 %v3886_v42, %v1933_v20 }
 0x420   : > { %v1999_v30 = vadd.f32 %v2587_v15, %v1967_v23 }
 0x422   : > { %2031 = vst.msk [vmem:[%s3898_s26 + $0xe8] sm:$0xff] %vm488_vm0, %v1999_v30  ;;  %v1866_v2 = vpop.f32.mrf.mxu2 }
 0x423   : > { %v1867_v8 = vadd.f32 %v1866_v2, %v1753_v12  ;;  %v2557_v10 = vpop.eup %2556 }
 0x424   : > { %v1756_v59 = vpop.f32.mrf.mxu1 }
 0x425   : > { %v1934_v35 = vmul.f32 %v2555_v28, %v1867_v8 }
 0x427   : > { %v1968_v58 = vmul.f32 %v3886_v42, %v1934_v35 }
 0x429   : > { %v2000_v11 = vadd.f32 %v2588_v14, %v1968_v58 }
 0x42a   : > { %v1869_v52 = vpop.f32.mrf.mxu2 }
 0x42b   : > { %2032 = vst.msk [vmem:[%s3898_s26 + $0xf0] sm:$0xff] %vm488_vm0, %v2000_v11  ;;  %v1870_v17 = vadd.f32 %v1869_v52, %v1756_v59 }
 0x42d   : > { %v1935_v4 = vmul.f32 %v2557_v10, %v1870_v17 }
 0x42f   : > { %v1969_v54 = vmul.f32 %v3886_v42, %v1935_v4 }
 0x431   : > { %v2001_v63 = vadd.f32 %v2589_v27, %v1969_v54 }
 0x433   : > { %2033 = vst.msk [vmem:[%s3898_s26 + $0xf8] sm:$0xff] %vm488_vm0, %v2001_v63 }
 0x434   : > { %2677 = shalt.err (!%p2674_p13)
}
 0x435   : > { %s2740_s25 = smov 128   ;;  %s2741_s17 = smov 8  }
 0x436   : > { %2296 = dma.vmem_to_hbm [thread:$0]  (%p2846_p9), %s2050_s29, 4096, %s2052_s30, %s2035_s14, %s2740_s25, %s2740_s25, %s2741_s17  }
 0x437 PF: > { %s2066_s24 = sand.u32 1, %s2716_s11   ;;  %p2306_p0 = pnand %p2165_p12, %p2853_p11 }
 0x438   : > { %s2067_s26 = scalar_lea.sflag [#allocation5], %s2066_s24 }
 0x439   : > { %p2307_p1 = pneg %p2306_p0 }
 0x43b   : > { %2711 = dma.done.wait (%p2307_p1), %s2067_s26, 4096  }
 0x43c   : > { %2713 = vsyncadd (%p2307_p1), %s2067_s26, 4294963200  ;;  %s29_s16 = sadd.s32 1, %s2736_s16   ;;  %s4132_s18 = sld [smem:[#allocation12_spill]] }
 0x43d   : > { %p26_p2 = scmp.ge.s32.totalorder %s29_s16, 4   ;;  %s4133_s13 = sld [smem:[#allocation15_spill]] }
 0x43e   : > { %s4134_s14 = sld [smem:[#allocation13_spill]]  ;;  %s4136_s11 = smov %s2720_s12 }
 0x43f   : > { %s4135_s15 = sld [smem:[#allocation14_spill]]  ;;  %28 = sbr.rel (!%p26_p2) target bundleno = 11 (0xb), region = 114 }
 0x442   : > { %s4137_s12 = smov %s4132_s18 }
 0x444   :  { %2073 = vsyncpa [#allocation4], 1 }
 0x445   :  { %2075 = vsyncpa [#allocation4 + $0x1], 1 }
 0x446   :  { %2076 = vsyncpa [#allocation7], 1 }
 0x447   :  { %2078 = vsyncpa [#allocation7 + $0x1], 1 }
 0x448   :  { %2079 = vsyncpa [#allocation5], 1 }
 0x449   :  { %2081 = vsyncpa [#allocation5 + $0x1], 1 }

</bundles_post_ra>
